<compile_context>
chip_gen: v5e
topology: v5e:2x2
jax: 0.10.0
libtpu: 0.0.40
codegen_flags: <defaults>
</compile_context>

<pallas_src>
import jax
import jax.numpy as jnp
from jax.experimental import pallas as pl
from jax.experimental.pallas import tpu as pltpu


def _sine_kernel(x_ref, wih_ref, whh_ref, b_ref, wlin_ref, blin_ref,
                 h0_ref, c0_ref,
                 y_ref, hN_ref, cN_ref,
                 gx_sc, hall_sc):
    """Whole forward pass in one grid step.

    x_ref    : (S*B, I)   inputs for all timesteps (time-major, flattened)
    wih_ref  : (I, 4H)    W_ih^T   (gate order i, f, g, o -- PyTorch convention)
    whh_ref  : (H, 4H)    W_hh^T
    b_ref    : (1, 4H)    b_ih + b_hh
    wlin_ref : (O, H)     W_linear (row-major, as stored by nn.Linear)
    blin_ref : (1, O)     b_linear
    h0/c0    : (B, H)     initial hidden / cell state
    y_ref    : (S*B, O)   outputs for all timesteps
    hN/cN    : (B, H)     final hidden / cell state
    gx_sc    : (S*B, 4H)  VMEM scratch: precomputed input projection
    hall_sc  : (S*B, H)   VMEM scratch: per-timestep hidden states
    """
    SB, I = x_ref.shape
    B, H = h0_ref.shape
    S = SB // B
    O = wlin_ref.shape[0]

    # ---- Input projection for all timesteps at once (off the serial path).
    # input_dim == 1 in this module, so the "matmul" is a broadcast multiply
    # (VPU); fall back to an MXU dot for general I.
    if I == 1:
        gx_sc[...] = x_ref[...] * wih_ref[...] + b_ref[...]        # (S*B, 4H)
    else:
        gx_sc[...] = (jnp.dot(x_ref[...], wih_ref[...],
                              preferred_element_type=jnp.float32)
                      + b_ref[...])

    # ---- Serial LSTM recurrence (only h @ W_hh^T + gate math per step).
    def step(t, carry):
        h, c = carry
        row = pl.multiple_of(t * B, B)                             # sublane-aligned
        gates = gx_sc[pl.ds(row, B), :] + jnp.dot(
            h, whh_ref[...], preferred_element_type=jnp.float32)   # (B, 4H)

        i_g = jax.nn.sigmoid(gates[:, 0 * H:1 * H])
        f_g = jax.nn.sigmoid(gates[:, 1 * H:2 * H])
        g_g = jnp.tanh(gates[:, 2 * H:3 * H])
        o_g = jax.nn.sigmoid(gates[:, 3 * H:4 * H])

        c_new = f_g * c + i_g * g_g
        h_new = o_g * jnp.tanh(c_new)

        hall_sc[pl.ds(row, B), :] = h_new                          # lane-dense store
        return h_new, c_new

    h_fin, c_fin = jax.lax.fori_loop(
        0, S, step, (h0_ref[...], c0_ref[...]), unroll=True)

    # Final states written exactly once.
    hN_ref[...] = h_fin.astype(hN_ref.dtype)
    cN_ref[...] = c_fin.astype(cN_ref.dtype)

    # ---- tanh + Linear head, batched over all timesteps (off the recurrence).
    th = jnp.tanh(hall_sc[...])                                    # (S*B, H)
    if O == 1:
        # VPU multiply + lane reduction; avoids an N=1 MXU matmul.
        y = jnp.sum(th * wlin_ref[...], axis=-1, keepdims=True) + blin_ref[...]
    else:
        y = (jnp.dot(th, wlin_ref[...].T,
                     preferred_element_type=jnp.float32) + blin_ref[...])
    y_ref[...] = y.astype(y_ref.dtype)


def sine_forward(x, w_ih, w_hh, b_ih, b_hh, w_lin, b_lin, h0, c0):
    """x: (S, B, I). Returns (y (S,B,O), h_final (B,H), c_final (B,H))."""
    S, B, I = x.shape
    H4 = w_ih.shape[0]
    H = H4 // 4
    O = w_lin.shape[0]

    x_flat = x.reshape(S * B, I)          # host-side reshape, free
    wih_T = w_ih.T                        # (I, 4H)
    whh_T = w_hh.T                        # (H, 4H)
    bias = (b_ih + b_hh).reshape(1, 4 * H)
    blin = b_lin.reshape(1, O)

    full = lambda i: (0, 0)
    grid_spec = pltpu.PrefetchScalarGridSpec(
        num_scalar_prefetch=0,
        grid=(1,),                                       # single kernel invocation
        in_specs=[
            pl.BlockSpec((S * B, I), full),              # x (flattened, time-major)
            pl.BlockSpec((I, 4 * H), full),              # W_ih^T
            pl.BlockSpec((H, 4 * H), full),              # W_hh^T
            pl.BlockSpec((1, 4 * H), full),              # bias
            pl.BlockSpec((O, H), full),                  # W_lin
            pl.BlockSpec((1, O), full),                  # b_lin
            pl.BlockSpec((B, H), full),                  # h0
            pl.BlockSpec((B, H), full),                  # c0
        ],
        out_specs=[
            pl.BlockSpec((S * B, O), full),              # y (flattened)
            pl.BlockSpec((B, H), full),                  # h_final
            pl.BlockSpec((B, H), full),                  # c_final
        ],
        scratch_shapes=[
            pltpu.VMEM((S * B, 4 * H), jnp.float32),     # precomputed gates_x
            pltpu.VMEM((S * B, H), jnp.float32),         # all hidden states
        ],
    )

    # NOTE: at production hidden sizes (e.g. H ~ 2K on v7x) W_hh^T residency
    # would need vmem_limit_bytes / bf16 weights; at these sizes total VMEM
    # use is well under 1 MiB on all generations.
    y_flat, hN, cN = pl.pallas_call(
        _sine_kernel,
        out_shape=(
            jax.ShapeDtypeStruct((S * B, O), jnp.float32),
            jax.ShapeDtypeStruct((B, H), jnp.float32),
            jax.ShapeDtypeStruct((B, H), jnp.float32),
        ),
        grid_spec=grid_spec,
        compiler_params=pltpu.CompilerParams(
            dimension_semantics=("arbitrary",)),
    )(x_flat, wih_T, whh_T, bias, w_lin, blin, h0, c0)

    return y_flat.reshape(S, B, O), hN, cN


def sine_reference(x, w_ih, w_hh, b_ih, b_hh, w_lin, b_lin, h0, c0):
    """Pure-JAX reference (PyTorch LSTM gate order: i, f, g, o)."""
    wih_T, whh_T = w_ih.T, w_hh.T
    b = b_ih + b_hh
    wlin_T = w_lin.T

    def step(carry, x_t):
        h, c = carry
        gates = x_t @ wih_T + h @ whh_T + b
        i, f, g, o = jnp.split(gates, 4, axis=-1)
        i, f, o = jax.nn.sigmoid(i), jax.nn.sigmoid(f), jax.nn.sigmoid(o)
        g = jnp.tanh(g)
        c = f * c + i * g
        h = o * jnp.tanh(c)
        y = jnp.tanh(h) @ wlin_T + b_lin
        return (h, c), y

    (hN, cN), ys = jax.lax.scan(step, (h0, c0), x)
    return ys, hN, cN


if __name__ == "__main__":
    # Small shapes consistent with the module (input_dim=1, output_dim=1,
    # unidirectional single-layer LSTM); hidden_dim scaled down to 128.
    S, B, I, H, O = 8, 8, 1, 128, 1

    key = jax.random.PRNGKey(0)
    ks = jax.random.split(key, 8)
    bound = 1.0 / jnp.sqrt(H)  # PyTorch default init range

    x = jax.random.normal(ks[0], (S, B, I), dtype=jnp.float32)
    w_ih = jax.random.uniform(ks[1], (4 * H, I), jnp.float32, -bound, bound)
    w_hh = jax.random.uniform(ks[2], (4 * H, H), jnp.float32, -bound, bound)
    b_ih = jax.random.uniform(ks[3], (4 * H,), jnp.float32, -bound, bound)
    b_hh = jax.random.uniform(ks[4], (4 * H,), jnp.float32, -bound, bound)
    w_lin = jax.random.uniform(ks[5], (O, H), jnp.float32, -bound, bound)
    b_lin = jax.random.uniform(ks[6], (O,), jnp.float32, -bound, bound)
    h0 = jnp.zeros((B, H), jnp.float32)   # module's initHidden() -> zeros
    c0 = jnp.zeros((B, H), jnp.float32)

    y, hN, cN = sine_forward(x, w_ih, w_hh, b_ih, b_hh, w_lin, b_lin, h0, c0)
    jax.block_until_ready((y, hN, cN))

    y_ref, hN_ref, cN_ref = sine_reference(
        x, w_ih, w_hh, b_ih, b_hh, w_lin, b_lin, h0, c0)

    assert y.shape == (S, B, O)
    assert jnp.allclose(y, y_ref, rtol=1e-5, atol=1e-5)
    assert jnp.allclose(hN, hN_ref, rtol=1e-5, atol=1e-5)
    assert jnp.allclose(cN, cN_ref, rtol=1e-5, atol=1e-5)

    print("KERNEL_OK")
</pallas_src>

<mosaic_0001>
module attributes {stable_mosaic.version = 11 : i64} {
  func.func @_sine_kernel(%arg0: i32, %arg1: memref<64x1xf32, #tpu.memory_space<vmem>>, %arg2: memref<1x512xf32, #tpu.memory_space<vmem>>, %arg3: memref<128x512xf32, #tpu.memory_space<vmem>>, %arg4: memref<1x512xf32, #tpu.memory_space<vmem>>, %arg5: memref<1x128xf32, #tpu.memory_space<vmem>>, %arg6: memref<1x1xf32, #tpu.memory_space<vmem>>, %arg7: memref<8x128xf32, #tpu.memory_space<vmem>>, %arg8: memref<8x128xf32, #tpu.memory_space<vmem>>, %arg9: memref<64x1xf32, #tpu.memory_space<vmem>>, %arg10: memref<8x128xf32, #tpu.memory_space<vmem>>, %arg11: memref<8x128xf32, #tpu.memory_space<vmem>>, %arg12: memref<64x512xf32, #tpu.memory_space<vmem>>, %arg13: memref<64x128xf32, #tpu.memory_space<vmem>>) attributes {dimension_semantics = [#tpu.dimension_semantics<arbitrary>], iteration_bounds = array<i64: 1>, scalar_prefetch = 0 : i64, scratch_operands = 2 : i64, tpu.core_type = #tpu.core_type<tc>, window_params = [{pipeline_mode = #tpu.pipeline_mode<synchronous>, transform_indices = @transform_0, window_bounds = array<i64: 64, 1>}, {pipeline_mode = #tpu.pipeline_mode<synchronous>, transform_indices = @transform_1, window_bounds = array<i64: 1, 512>}, {pipeline_mode = #tpu.pipeline_mode<synchronous>, transform_indices = @transform_2, window_bounds = array<i64: 128, 512>}, {pipeline_mode = #tpu.pipeline_mode<synchronous>, transform_indices = @transform_3, window_bounds = array<i64: 1, 512>}, {pipeline_mode = #tpu.pipeline_mode<synchronous>, transform_indices = @transform_4, window_bounds = array<i64: 1, 128>}, {pipeline_mode = #tpu.pipeline_mode<synchronous>, transform_indices = @transform_5, window_bounds = array<i64: 1, 1>}, {pipeline_mode = #tpu.pipeline_mode<synchronous>, transform_indices = @transform_6, window_bounds = array<i64: 8, 128>}, {pipeline_mode = #tpu.pipeline_mode<synchronous>, transform_indices = @transform_7, window_bounds = array<i64: 8, 128>}, {pipeline_mode = #tpu.pipeline_mode<synchronous>, transform_indices = @transform_8, window_bounds = array<i64: 64, 1>}, {pipeline_mode = #tpu.pipeline_mode<synchronous>, transform_indices = @transform_9, window_bounds = array<i64: 8, 128>}, {pipeline_mode = #tpu.pipeline_mode<synchronous>, transform_indices = @transform_10, window_bounds = array<i64: 8, 128>}]} {
    %c0 = arith.constant 0 : index
    %c0_0 = arith.constant 0 : index
    %0 = vector.load %arg1[%c0, %c0_0] : memref<64x1xf32, #tpu.memory_space<vmem>>, vector<64x1xf32>
    %c0_1 = arith.constant 0 : index
    %c0_2 = arith.constant 0 : index
    %1 = vector.load %arg2[%c0_1, %c0_2] : memref<1x512xf32, #tpu.memory_space<vmem>>, vector<1x512xf32>
    %2 = vector.broadcast %0 : vector<64x1xf32> to vector<64x512xf32>
    %3 = vector.broadcast %1 : vector<1x512xf32> to vector<64x512xf32>
    %4 = arith.mulf %2, %3 : vector<64x512xf32>
    %c0_3 = arith.constant 0 : index
    %c0_4 = arith.constant 0 : index
    %5 = vector.load %arg4[%c0_3, %c0_4] : memref<1x512xf32, #tpu.memory_space<vmem>>, vector<1x512xf32>
    %6 = vector.broadcast %5 : vector<1x512xf32> to vector<64x512xf32>
    %7 = arith.addf %4, %6 : vector<64x512xf32>
    %c0_5 = arith.constant 0 : index
    %c0_6 = arith.constant 0 : index
    %8 = vector.load %arg12[%c0_5, %c0_6] : memref<64x512xf32, #tpu.memory_space<vmem>>, vector<64x512xf32>
    tpu.vector_store %arg12[%c0_5, %c0_6], %7 {strides = array<i32>} : memref<64x512xf32, #tpu.memory_space<vmem>>, vector<64x512xf32>,
    %c0_7 = arith.constant 0 : index
    %c0_8 = arith.constant 0 : index
    %9 = vector.load %arg7[%c0_7, %c0_8] : memref<8x128xf32, #tpu.memory_space<vmem>>, vector<8x128xf32>
    %c0_9 = arith.constant 0 : index
    %c0_10 = arith.constant 0 : index
    %10 = vector.load %arg8[%c0_9, %c0_10] : memref<8x128xf32, #tpu.memory_space<vmem>>, vector<8x128xf32>
    %c0_i32 = arith.constant 0 : i32
    %c8_i32 = arith.constant 8 : i32
    %11 = arith.muli %c0_i32, %c8_i32 : i32
    %12 = tpu.assume_multiple %11, 8 : i32
    %13 = arith.index_cast %12 : i32 to index
    %c0_11 = arith.constant 0 : index
    %14 = vector.load %arg12[%13, %c0_11] : memref<64x512xf32, #tpu.memory_space<vmem>>, vector<8x512xf32>
    %c0_12 = arith.constant 0 : index
    %c0_13 = arith.constant 0 : index
    %15 = vector.load %arg3[%c0_12, %c0_13] : memref<128x512xf32, #tpu.memory_space<vmem>>, vector<128x512xf32>
    %cst = arith.constant dense<0.000000e+00> : vector<8x512xf32>
    %16 = tpu.matmul %9, %15, %cst {dimension_numbers = #tpu.dot_dimension_numbers<[1], [0], [0], [1], [0, 0, 1, 1], [], []>} : vector<8x128xf32>, vector<128x512xf32>, vector<8x512xf32> -> vector<8x512xf32>
    %17 = arith.addf %14, %16 : vector<8x512xf32>
    %18 = vector.extract_strided_slice %17 {offsets = [0, 0], sizes = [8, 128], strides = [1, 1]} : vector<8x512xf32> to vector<8x128xf32>
    %19 = arith.negf %18 : vector<8x128xf32>
    %20 = math.exp %19 : vector<8x128xf32>
    %cst_14 = arith.constant 1.000000e+00 : f32
    %21 = vector.broadcast %cst_14 : f32 to vector<8x128xf32>
    %22 = arith.addf %21, %20 : vector<8x128xf32>
    %23 = arith.divf %21, %22 : vector<8x128xf32>
    %24 = vector.extract_strided_slice %17 {offsets = [0, 128], sizes = [8, 128], strides = [1, 1]} : vector<8x512xf32> to vector<8x128xf32>
    %25 = arith.negf %24 : vector<8x128xf32>
    %26 = math.exp %25 : vector<8x128xf32>
    %cst_15 = arith.constant 1.000000e+00 : f32
    %27 = vector.broadcast %cst_15 : f32 to vector<8x128xf32>
    %28 = arith.addf %27, %26 : vector<8x128xf32>
    %29 = arith.divf %27, %28 : vector<8x128xf32>
    %30 = vector.extract_strided_slice %17 {offsets = [0, 256], sizes = [8, 128], strides = [1, 1]} : vector<8x512xf32> to vector<8x128xf32>
    %31 = math.tanh %30 : vector<8x128xf32>
    %32 = vector.extract_strided_slice %17 {offsets = [0, 384], sizes = [8, 128], strides = [1, 1]} : vector<8x512xf32> to vector<8x128xf32>
    %33 = arith.negf %32 : vector<8x128xf32>
    %34 = math.exp %33 : vector<8x128xf32>
    %cst_16 = arith.constant 1.000000e+00 : f32
    %35 = vector.broadcast %cst_16 : f32 to vector<8x128xf32>
    %36 = arith.addf %35, %34 : vector<8x128xf32>
    %37 = arith.divf %35, %36 : vector<8x128xf32>
    %38 = arith.mulf %29, %10 : vector<8x128xf32>
    %39 = arith.mulf %23, %31 : vector<8x128xf32>
    %40 = arith.addf %38, %39 : vector<8x128xf32>
    %41 = math.tanh %40 : vector<8x128xf32>
    %42 = arith.mulf %37, %41 : vector<8x128xf32>
    %43 = arith.index_cast %12 : i32 to index
    %c0_17 = arith.constant 0 : index
    %44 = vector.load %arg13[%43, %c0_17] : memref<64x128xf32, #tpu.memory_space<vmem>>, vector<8x128xf32>
    tpu.vector_store %arg13[%43, %c0_17], %42 {strides = array<i32>} : memref<64x128xf32, #tpu.memory_space<vmem>>, vector<8x128xf32>,
    %c1_i32 = arith.constant 1 : i32
    %c8_i32_18 = arith.constant 8 : i32
    %45 = arith.muli %c1_i32, %c8_i32_18 : i32
    %46 = tpu.assume_multiple %45, 8 : i32
    %47 = arith.index_cast %46 : i32 to index
    %c0_19 = arith.constant 0 : index
    %48 = vector.load %arg12[%47, %c0_19] : memref<64x512xf32, #tpu.memory_space<vmem>>, vector<8x512xf32>
    %c0_20 = arith.constant 0 : index
    %c0_21 = arith.constant 0 : index
    %49 = vector.load %arg3[%c0_20, %c0_21] : memref<128x512xf32, #tpu.memory_space<vmem>>, vector<128x512xf32>
    %cst_22 = arith.constant dense<0.000000e+00> : vector<8x512xf32>
    %50 = tpu.matmul %42, %49, %cst_22 {dimension_numbers = #tpu.dot_dimension_numbers<[1], [0], [0], [1], [0, 0, 1, 1], [], []>} : vector<8x128xf32>, vector<128x512xf32>, vector<8x512xf32> -> vector<8x512xf32>
    %51 = arith.addf %48, %50 : vector<8x512xf32>
    %52 = vector.extract_strided_slice %51 {offsets = [0, 0], sizes = [8, 128], strides = [1, 1]} : vector<8x512xf32> to vector<8x128xf32>
    %53 = arith.negf %52 : vector<8x128xf32>
    %54 = math.exp %53 : vector<8x128xf32>
    %cst_23 = arith.constant 1.000000e+00 : f32
    %55 = vector.broadcast %cst_23 : f32 to vector<8x128xf32>
    %56 = arith.addf %55, %54 : vector<8x128xf32>
    %57 = arith.divf %55, %56 : vector<8x128xf32>
    %58 = vector.extract_strided_slice %51 {offsets = [0, 128], sizes = [8, 128], strides = [1, 1]} : vector<8x512xf32> to vector<8x128xf32>
    %59 = arith.negf %58 : vector<8x128xf32>
    %60 = math.exp %59 : vector<8x128xf32>
    %cst_24 = arith.constant 1.000000e+00 : f32
    %61 = vector.broadcast %cst_24 : f32 to vector<8x128xf32>
    %62 = arith.addf %61, %60 : vector<8x128xf32>
    %63 = arith.divf %61, %62 : vector<8x128xf32>
    %64 = vector.extract_strided_slice %51 {offsets = [0, 256], sizes = [8, 128], strides = [1, 1]} : vector<8x512xf32> to vector<8x128xf32>
    %65 = math.tanh %64 : vector<8x128xf32>
    %66 = vector.extract_strided_slice %51 {offsets = [0, 384], sizes = [8, 128], strides = [1, 1]} : vector<8x512xf32> to vector<8x128xf32>
    %67 = arith.negf %66 : vector<8x128xf32>
    %68 = math.exp %67 : vector<8x128xf32>
    %cst_25 = arith.constant 1.000000e+00 : f32
    %69 = vector.broadcast %cst_25 : f32 to vector<8x128xf32>
    %70 = arith.addf %69, %68 : vector<8x128xf32>
    %71 = arith.divf %69, %70 : vector<8x128xf32>
    %72 = arith.mulf %63, %40 : vector<8x128xf32>
    %73 = arith.mulf %57, %65 : vector<8x128xf32>
    %74 = arith.addf %72, %73 : vector<8x128xf32>
    %75 = math.tanh %74 : vector<8x128xf32>
    %76 = arith.mulf %71, %75 : vector<8x128xf32>
    %77 = arith.index_cast %46 : i32 to index
    %c0_26 = arith.constant 0 : index
    %78 = vector.load %arg13[%77, %c0_26] : memref<64x128xf32, #tpu.memory_space<vmem>>, vector<8x128xf32>
    tpu.vector_store %arg13[%77, %c0_26], %76 {strides = array<i32>} : memref<64x128xf32, #tpu.memory_space<vmem>>, vector<8x128xf32>,
    %c2_i32 = arith.constant 2 : i32
    %c8_i32_27 = arith.constant 8 : i32
    %79 = arith.muli %c2_i32, %c8_i32_27 : i32
    %80 = tpu.assume_multiple %79, 8 : i32
    %81 = arith.index_cast %80 : i32 to index
    %c0_28 = arith.constant 0 : index
    %82 = vector.load %arg12[%81, %c0_28] : memref<64x512xf32, #tpu.memory_space<vmem>>, vector<8x512xf32>
    %c0_29 = arith.constant 0 : index
    %c0_30 = arith.constant 0 : index
    %83 = vector.load %arg3[%c0_29, %c0_30] : memref<128x512xf32, #tpu.memory_space<vmem>>, vector<128x512xf32>
    %cst_31 = arith.constant dense<0.000000e+00> : vector<8x512xf32>
    %84 = tpu.matmul %76, %83, %cst_31 {dimension_numbers = #tpu.dot_dimension_numbers<[1], [0], [0], [1], [0, 0, 1, 1], [], []>} : vector<8x128xf32>, vector<128x512xf32>, vector<8x512xf32> -> vector<8x512xf32>
    %85 = arith.addf %82, %84 : vector<8x512xf32>
    %86 = vector.extract_strided_slice %85 {offsets = [0, 0], sizes = [8, 128], strides = [1, 1]} : vector<8x512xf32> to vector<8x128xf32>
    %87 = arith.negf %86 : vector<8x128xf32>
    %88 = math.exp %87 : vector<8x128xf32>
    %cst_32 = arith.constant 1.000000e+00 : f32
    %89 = vector.broadcast %cst_32 : f32 to vector<8x128xf32>
    %90 = arith.addf %89, %88 : vector<8x128xf32>
    %91 = arith.divf %89, %90 : vector<8x128xf32>
    %92 = vector.extract_strided_slice %85 {offsets = [0, 128], sizes = [8, 128], strides = [1, 1]} : vector<8x512xf32> to vector<8x128xf32>
    %93 = arith.negf %92 : vector<8x128xf32>
    %94 = math.exp %93 : vector<8x128xf32>
    %cst_33 = arith.constant 1.000000e+00 : f32
    %95 = vector.broadcast %cst_33 : f32 to vector<8x128xf32>
    %96 = arith.addf %95, %94 : vector<8x128xf32>
    %97 = arith.divf %95, %96 : vector<8x128xf32>
    %98 = vector.extract_strided_slice %85 {offsets = [0, 256], sizes = [8, 128], strides = [1, 1]} : vector<8x512xf32> to vector<8x128xf32>
    %99 = math.tanh %98 : vector<8x128xf32>
    %100 = vector.extract_strided_slice %85 {offsets = [0, 384], sizes = [8, 128], strides = [1, 1]} : vector<8x512xf32> to vector<8x128xf32>
    %101 = arith.negf %100 : vector<8x128xf32>
    %102 = math.exp %101 : vector<8x128xf32>
    %cst_34 = arith.constant 1.000000e+00 : f32
    %103 = vector.broadcast %cst_34 : f32 to vector<8x128xf32>
    %104 = arith.addf %103, %102 : vector<8x128xf32>
    %105 = arith.divf %103, %104 : vector<8x128xf32>
    %106 = arith.mulf %97, %74 : vector<8x128xf32>
    %107 = arith.mulf %91, %99 : vector<8x128xf32>
    %108 = arith.addf %106, %107 : vector<8x128xf32>
    %109 = math.tanh %108 : vector<8x128xf32>
    %110 = arith.mulf %105, %109 : vector<8x128xf32>
    %111 = arith.index_cast %80 : i32 to index
    %c0_35 = arith.constant 0 : index
    %112 = vector.load %arg13[%111, %c0_35] : memref<64x128xf32, #tpu.memory_space<vmem>>, vector<8x128xf32>
    tpu.vector_store %arg13[%111, %c0_35], %110 {strides = array<i32>} : memref<64x128xf32, #tpu.memory_space<vmem>>, vector<8x128xf32>,
    %c3_i32 = arith.constant 3 : i32
    %c8_i32_36 = arith.constant 8 : i32
    %113 = arith.muli %c3_i32, %c8_i32_36 : i32
    %114 = tpu.assume_multiple %113, 8 : i32
    %115 = arith.index_cast %114 : i32 to index
    %c0_37 = arith.constant 0 : index
    %116 = vector.load %arg12[%115, %c0_37] : memref<64x512xf32, #tpu.memory_space<vmem>>, vector<8x512xf32>
    %c0_38 = arith.constant 0 : index
    %c0_39 = arith.constant 0 : index
    %117 = vector.load %arg3[%c0_38, %c0_39] : memref<128x512xf32, #tpu.memory_space<vmem>>, vector<128x512xf32>
    %cst_40 = arith.constant dense<0.000000e+00> : vector<8x512xf32>
    %118 = tpu.matmul %110, %117, %cst_40 {dimension_numbers = #tpu.dot_dimension_numbers<[1], [0], [0], [1], [0, 0, 1, 1], [], []>} : vector<8x128xf32>, vector<128x512xf32>, vector<8x512xf32> -> vector<8x512xf32>
    %119 = arith.addf %116, %118 : vector<8x512xf32>
    %120 = vector.extract_strided_slice %119 {offsets = [0, 0], sizes = [8, 128], strides = [1, 1]} : vector<8x512xf32> to vector<8x128xf32>
    %121 = arith.negf %120 : vector<8x128xf32>
    %122 = math.exp %121 : vector<8x128xf32>
    %cst_41 = arith.constant 1.000000e+00 : f32
    %123 = vector.broadcast %cst_41 : f32 to vector<8x128xf32>
    %124 = arith.addf %123, %122 : vector<8x128xf32>
    %125 = arith.divf %123, %124 : vector<8x128xf32>
    %126 = vector.extract_strided_slice %119 {offsets = [0, 128], sizes = [8, 128], strides = [1, 1]} : vector<8x512xf32> to vector<8x128xf32>
    %127 = arith.negf %126 : vector<8x128xf32>
    %128 = math.exp %127 : vector<8x128xf32>
    %cst_42 = arith.constant 1.000000e+00 : f32
    %129 = vector.broadcast %cst_42 : f32 to vector<8x128xf32>
    %130 = arith.addf %129, %128 : vector<8x128xf32>
    %131 = arith.divf %129, %130 : vector<8x128xf32>
    %132 = vector.extract_strided_slice %119 {offsets = [0, 256], sizes = [8, 128], strides = [1, 1]} : vector<8x512xf32> to vector<8x128xf32>
    %133 = math.tanh %132 : vector<8x128xf32>
    %134 = vector.extract_strided_slice %119 {offsets = [0, 384], sizes = [8, 128], strides = [1, 1]} : vector<8x512xf32> to vector<8x128xf32>
    %135 = arith.negf %134 : vector<8x128xf32>
    %136 = math.exp %135 : vector<8x128xf32>
    %cst_43 = arith.constant 1.000000e+00 : f32
    %137 = vector.broadcast %cst_43 : f32 to vector<8x128xf32>
    %138 = arith.addf %137, %136 : vector<8x128xf32>
    %139 = arith.divf %137, %138 : vector<8x128xf32>
    %140 = arith.mulf %131, %108 : vector<8x128xf32>
    %141 = arith.mulf %125, %133 : vector<8x128xf32>
    %142 = arith.addf %140, %141 : vector<8x128xf32>
    %143 = math.tanh %142 : vector<8x128xf32>
    %144 = arith.mulf %139, %143 : vector<8x128xf32>
    %145 = arith.index_cast %114 : i32 to index
    %c0_44 = arith.constant 0 : index
    %146 = vector.load %arg13[%145, %c0_44] : memref<64x128xf32, #tpu.memory_space<vmem>>, vector<8x128xf32>
    tpu.vector_store %arg13[%145, %c0_44], %144 {strides = array<i32>} : memref<64x128xf32, #tpu.memory_space<vmem>>, vector<8x128xf32>,
    %c4_i32 = arith.constant 4 : i32
    %c8_i32_45 = arith.constant 8 : i32
    %147 = arith.muli %c4_i32, %c8_i32_45 : i32
    %148 = tpu.assume_multiple %147, 8 : i32
    %149 = arith.index_cast %148 : i32 to index
    %c0_46 = arith.constant 0 : index
    %150 = vector.load %arg12[%149, %c0_46] : memref<64x512xf32, #tpu.memory_space<vmem>>, vector<8x512xf32>
    %c0_47 = arith.constant 0 : index
    %c0_48 = arith.constant 0 : index
    %151 = vector.load %arg3[%c0_47, %c0_48] : memref<128x512xf32, #tpu.memory_space<vmem>>, vector<128x512xf32>
    %cst_49 = arith.constant dense<0.000000e+00> : vector<8x512xf32>
    %152 = tpu.matmul %144, %151, %cst_49 {dimension_numbers = #tpu.dot_dimension_numbers<[1], [0], [0], [1], [0, 0, 1, 1], [], []>} : vector<8x128xf32>, vector<128x512xf32>, vector<8x512xf32> -> vector<8x512xf32>
    %153 = arith.addf %150, %152 : vector<8x512xf32>
    %154 = vector.extract_strided_slice %153 {offsets = [0, 0], sizes = [8, 128], strides = [1, 1]} : vector<8x512xf32> to vector<8x128xf32>
    %155 = arith.negf %154 : vector<8x128xf32>
    %156 = math.exp %155 : vector<8x128xf32>
    %cst_50 = arith.constant 1.000000e+00 : f32
    %157 = vector.broadcast %cst_50 : f32 to vector<8x128xf32>
    %158 = arith.addf %157, %156 : vector<8x128xf32>
    %159 = arith.divf %157, %158 : vector<8x128xf32>
    %160 = vector.extract_strided_slice %153 {offsets = [0, 128], sizes = [8, 128], strides = [1, 1]} : vector<8x512xf32> to vector<8x128xf32>
    %161 = arith.negf %160 : vector<8x128xf32>
    %162 = math.exp %161 : vector<8x128xf32>
    %cst_51 = arith.constant 1.000000e+00 : f32
    %163 = vector.broadcast %cst_51 : f32 to vector<8x128xf32>
    %164 = arith.addf %163, %162 : vector<8x128xf32>
    %165 = arith.divf %163, %164 : vector<8x128xf32>
    %166 = vector.extract_strided_slice %153 {offsets = [0, 256], sizes = [8, 128], strides = [1, 1]} : vector<8x512xf32> to vector<8x128xf32>
    %167 = math.tanh %166 : vector<8x128xf32>
    %168 = vector.extract_strided_slice %153 {offsets = [0, 384], sizes = [8, 128], strides = [1, 1]} : vector<8x512xf32> to vector<8x128xf32>
    %169 = arith.negf %168 : vector<8x128xf32>
    %170 = math.exp %169 : vector<8x128xf32>
    %cst_52 = arith.constant 1.000000e+00 : f32
    %171 = vector.broadcast %cst_52 : f32 to vector<8x128xf32>
    %172 = arith.addf %171, %170 : vector<8x128xf32>
    %173 = arith.divf %171, %172 : vector<8x128xf32>
    %174 = arith.mulf %165, %142 : vector<8x128xf32>
    %175 = arith.mulf %159, %167 : vector<8x128xf32>
    %176 = arith.addf %174, %175 : vector<8x128xf32>
    %177 = math.tanh %176 : vector<8x128xf32>
    %178 = arith.mulf %173, %177 : vector<8x128xf32>
    %179 = arith.index_cast %148 : i32 to index
    %c0_53 = arith.constant 0 : index
    %180 = vector.load %arg13[%179, %c0_53] : memref<64x128xf32, #tpu.memory_space<vmem>>, vector<8x128xf32>
    tpu.vector_store %arg13[%179, %c0_53], %178 {strides = array<i32>} : memref<64x128xf32, #tpu.memory_space<vmem>>, vector<8x128xf32>,
    %c5_i32 = arith.constant 5 : i32
    %c8_i32_54 = arith.constant 8 : i32
    %181 = arith.muli %c5_i32, %c8_i32_54 : i32
    %182 = tpu.assume_multiple %181, 8 : i32
    %183 = arith.index_cast %182 : i32 to index
    %c0_55 = arith.constant 0 : index
    %184 = vector.load %arg12[%183, %c0_55] : memref<64x512xf32, #tpu.memory_space<vmem>>, vector<8x512xf32>
    %c0_56 = arith.constant 0 : index
    %c0_57 = arith.constant 0 : index
    %185 = vector.load %arg3[%c0_56, %c0_57] : memref<128x512xf32, #tpu.memory_space<vmem>>, vector<128x512xf32>
    %cst_58 = arith.constant dense<0.000000e+00> : vector<8x512xf32>
    %186 = tpu.matmul %178, %185, %cst_58 {dimension_numbers = #tpu.dot_dimension_numbers<[1], [0], [0], [1], [0, 0, 1, 1], [], []>} : vector<8x128xf32>, vector<128x512xf32>, vector<8x512xf32> -> vector<8x512xf32>
    %187 = arith.addf %184, %186 : vector<8x512xf32>
    %188 = vector.extract_strided_slice %187 {offsets = [0, 0], sizes = [8, 128], strides = [1, 1]} : vector<8x512xf32> to vector<8x128xf32>
    %189 = arith.negf %188 : vector<8x128xf32>
    %190 = math.exp %189 : vector<8x128xf32>
    %cst_59 = arith.constant 1.000000e+00 : f32
    %191 = vector.broadcast %cst_59 : f32 to vector<8x128xf32>
    %192 = arith.addf %191, %190 : vector<8x128xf32>
    %193 = arith.divf %191, %192 : vector<8x128xf32>
    %194 = vector.extract_strided_slice %187 {offsets = [0, 128], sizes = [8, 128], strides = [1, 1]} : vector<8x512xf32> to vector<8x128xf32>
    %195 = arith.negf %194 : vector<8x128xf32>
    %196 = math.exp %195 : vector<8x128xf32>
    %cst_60 = arith.constant 1.000000e+00 : f32
    %197 = vector.broadcast %cst_60 : f32 to vector<8x128xf32>
    %198 = arith.addf %197, %196 : vector<8x128xf32>
    %199 = arith.divf %197, %198 : vector<8x128xf32>
    %200 = vector.extract_strided_slice %187 {offsets = [0, 256], sizes = [8, 128], strides = [1, 1]} : vector<8x512xf32> to vector<8x128xf32>
    %201 = math.tanh %200 : vector<8x128xf32>
    %202 = vector.extract_strided_slice %187 {offsets = [0, 384], sizes = [8, 128], strides = [1, 1]} : vector<8x512xf32> to vector<8x128xf32>
    %203 = arith.negf %202 : vector<8x128xf32>
    %204 = math.exp %203 : vector<8x128xf32>
    %cst_61 = arith.constant 1.000000e+00 : f32
    %205 = vector.broadcast %cst_61 : f32 to vector<8x128xf32>
    %206 = arith.addf %205, %204 : vector<8x128xf32>
    %207 = arith.divf %205, %206 : vector<8x128xf32>
    %208 = arith.mulf %199, %176 : vector<8x128xf32>
    %209 = arith.mulf %193, %201 : vector<8x128xf32>
    %210 = arith.addf %208, %209 : vector<8x128xf32>
    %211 = math.tanh %210 : vector<8x128xf32>
    %212 = arith.mulf %207, %211 : vector<8x128xf32>
    %213 = arith.index_cast %182 : i32 to index
    %c0_62 = arith.constant 0 : index
    %214 = vector.load %arg13[%213, %c0_62] : memref<64x128xf32, #tpu.memory_space<vmem>>, vector<8x128xf32>
    tpu.vector_store %arg13[%213, %c0_62], %212 {strides = array<i32>} : memref<64x128xf32, #tpu.memory_space<vmem>>, vector<8x128xf32>,
    %c6_i32 = arith.constant 6 : i32
    %c8_i32_63 = arith.constant 8 : i32
    %215 = arith.muli %c6_i32, %c8_i32_63 : i32
    %216 = tpu.assume_multiple %215, 8 : i32
    %217 = arith.index_cast %216 : i32 to index
    %c0_64 = arith.constant 0 : index
    %218 = vector.load %arg12[%217, %c0_64] : memref<64x512xf32, #tpu.memory_space<vmem>>, vector<8x512xf32>
    %c0_65 = arith.constant 0 : index
    %c0_66 = arith.constant 0 : index
    %219 = vector.load %arg3[%c0_65, %c0_66] : memref<128x512xf32, #tpu.memory_space<vmem>>, vector<128x512xf32>
    %cst_67 = arith.constant dense<0.000000e+00> : vector<8x512xf32>
    %220 = tpu.matmul %212, %219, %cst_67 {dimension_numbers = #tpu.dot_dimension_numbers<[1], [0], [0], [1], [0, 0, 1, 1], [], []>} : vector<8x128xf32>, vector<128x512xf32>, vector<8x512xf32> -> vector<8x512xf32>
    %221 = arith.addf %218, %220 : vector<8x512xf32>
    %222 = vector.extract_strided_slice %221 {offsets = [0, 0], sizes = [8, 128], strides = [1, 1]} : vector<8x512xf32> to vector<8x128xf32>
    %223 = arith.negf %222 : vector<8x128xf32>
    %224 = math.exp %223 : vector<8x128xf32>
    %cst_68 = arith.constant 1.000000e+00 : f32
    %225 = vector.broadcast %cst_68 : f32 to vector<8x128xf32>
    %226 = arith.addf %225, %224 : vector<8x128xf32>
    %227 = arith.divf %225, %226 : vector<8x128xf32>
    %228 = vector.extract_strided_slice %221 {offsets = [0, 128], sizes = [8, 128], strides = [1, 1]} : vector<8x512xf32> to vector<8x128xf32>
    %229 = arith.negf %228 : vector<8x128xf32>
    %230 = math.exp %229 : vector<8x128xf32>
    %cst_69 = arith.constant 1.000000e+00 : f32
    %231 = vector.broadcast %cst_69 : f32 to vector<8x128xf32>
    %232 = arith.addf %231, %230 : vector<8x128xf32>
    %233 = arith.divf %231, %232 : vector<8x128xf32>
    %234 = vector.extract_strided_slice %221 {offsets = [0, 256], sizes = [8, 128], strides = [1, 1]} : vector<8x512xf32> to vector<8x128xf32>
    %235 = math.tanh %234 : vector<8x128xf32>
    %236 = vector.extract_strided_slice %221 {offsets = [0, 384], sizes = [8, 128], strides = [1, 1]} : vector<8x512xf32> to vector<8x128xf32>
    %237 = arith.negf %236 : vector<8x128xf32>
    %238 = math.exp %237 : vector<8x128xf32>
    %cst_70 = arith.constant 1.000000e+00 : f32
    %239 = vector.broadcast %cst_70 : f32 to vector<8x128xf32>
    %240 = arith.addf %239, %238 : vector<8x128xf32>
    %241 = arith.divf %239, %240 : vector<8x128xf32>
    %242 = arith.mulf %233, %210 : vector<8x128xf32>
    %243 = arith.mulf %227, %235 : vector<8x128xf32>
    %244 = arith.addf %242, %243 : vector<8x128xf32>
    %245 = math.tanh %244 : vector<8x128xf32>
    %246 = arith.mulf %241, %245 : vector<8x128xf32>
    %247 = arith.index_cast %216 : i32 to index
    %c0_71 = arith.constant 0 : index
    %248 = vector.load %arg13[%247, %c0_71] : memref<64x128xf32, #tpu.memory_space<vmem>>, vector<8x128xf32>
    tpu.vector_store %arg13[%247, %c0_71], %246 {strides = array<i32>} : memref<64x128xf32, #tpu.memory_space<vmem>>, vector<8x128xf32>,
    %c7_i32 = arith.constant 7 : i32
    %c8_i32_72 = arith.constant 8 : i32
    %249 = arith.muli %c7_i32, %c8_i32_72 : i32
    %250 = tpu.assume_multiple %249, 8 : i32
    %251 = arith.index_cast %250 : i32 to index
    %c0_73 = arith.constant 0 : index
    %252 = vector.load %arg12[%251, %c0_73] : memref<64x512xf32, #tpu.memory_space<vmem>>, vector<8x512xf32>
    %c0_74 = arith.constant 0 : index
    %c0_75 = arith.constant 0 : index
    %253 = vector.load %arg3[%c0_74, %c0_75] : memref<128x512xf32, #tpu.memory_space<vmem>>, vector<128x512xf32>
    %cst_76 = arith.constant dense<0.000000e+00> : vector<8x512xf32>
    %254 = tpu.matmul %246, %253, %cst_76 {dimension_numbers = #tpu.dot_dimension_numbers<[1], [0], [0], [1], [0, 0, 1, 1], [], []>} : vector<8x128xf32>, vector<128x512xf32>, vector<8x512xf32> -> vector<8x512xf32>
    %255 = arith.addf %252, %254 : vector<8x512xf32>
    %256 = vector.extract_strided_slice %255 {offsets = [0, 0], sizes = [8, 128], strides = [1, 1]} : vector<8x512xf32> to vector<8x128xf32>
    %257 = arith.negf %256 : vector<8x128xf32>
    %258 = math.exp %257 : vector<8x128xf32>
    %cst_77 = arith.constant 1.000000e+00 : f32
    %259 = vector.broadcast %cst_77 : f32 to vector<8x128xf32>
    %260 = arith.addf %259, %258 : vector<8x128xf32>
    %261 = arith.divf %259, %260 : vector<8x128xf32>
    %262 = vector.extract_strided_slice %255 {offsets = [0, 128], sizes = [8, 128], strides = [1, 1]} : vector<8x512xf32> to vector<8x128xf32>
    %263 = arith.negf %262 : vector<8x128xf32>
    %264 = math.exp %263 : vector<8x128xf32>
    %cst_78 = arith.constant 1.000000e+00 : f32
    %265 = vector.broadcast %cst_78 : f32 to vector<8x128xf32>
    %266 = arith.addf %265, %264 : vector<8x128xf32>
    %267 = arith.divf %265, %266 : vector<8x128xf32>
    %268 = vector.extract_strided_slice %255 {offsets = [0, 256], sizes = [8, 128], strides = [1, 1]} : vector<8x512xf32> to vector<8x128xf32>
    %269 = math.tanh %268 : vector<8x128xf32>
    %270 = vector.extract_strided_slice %255 {offsets = [0, 384], sizes = [8, 128], strides = [1, 1]} : vector<8x512xf32> to vector<8x128xf32>
    %271 = arith.negf %270 : vector<8x128xf32>
    %272 = math.exp %271 : vector<8x128xf32>
    %cst_79 = arith.constant 1.000000e+00 : f32
    %273 = vector.broadcast %cst_79 : f32 to vector<8x128xf32>
    %274 = arith.addf %273, %272 : vector<8x128xf32>
    %275 = arith.divf %273, %274 : vector<8x128xf32>
    %276 = arith.mulf %267, %244 : vector<8x128xf32>
    %277 = arith.mulf %261, %269 : vector<8x128xf32>
    %278 = arith.addf %276, %277 : vector<8x128xf32>
    %279 = math.tanh %278 : vector<8x128xf32>
    %280 = arith.mulf %275, %279 : vector<8x128xf32>
    %281 = arith.index_cast %250 : i32 to index
    %c0_80 = arith.constant 0 : index
    %282 = vector.load %arg13[%281, %c0_80] : memref<64x128xf32, #tpu.memory_space<vmem>>, vector<8x128xf32>
    tpu.vector_store %arg13[%281, %c0_80], %280 {strides = array<i32>} : memref<64x128xf32, #tpu.memory_space<vmem>>, vector<8x128xf32>,
    %c8_i32_81 = arith.constant 8 : i32
    %c0_82 = arith.constant 0 : index
    %c0_83 = arith.constant 0 : index
    %283 = vector.load %arg10[%c0_82, %c0_83] : memref<8x128xf32, #tpu.memory_space<vmem>>, vector<8x128xf32>
    tpu.vector_store %arg10[%c0_82, %c0_83], %280 {strides = array<i32>} : memref<8x128xf32, #tpu.memory_space<vmem>>, vector<8x128xf32>,
    %c0_84 = arith.constant 0 : index
    %c0_85 = arith.constant 0 : index
    %284 = vector.load %arg11[%c0_84, %c0_85] : memref<8x128xf32, #tpu.memory_space<vmem>>, vector<8x128xf32>
    tpu.vector_store %arg11[%c0_84, %c0_85], %278 {strides = array<i32>} : memref<8x128xf32, #tpu.memory_space<vmem>>, vector<8x128xf32>,
    %c0_86 = arith.constant 0 : index
    %c0_87 = arith.constant 0 : index
    %285 = vector.load %arg13[%c0_86, %c0_87] : memref<64x128xf32, #tpu.memory_space<vmem>>, vector<64x128xf32>
    %286 = math.tanh %285 : vector<64x128xf32>
    %c0_88 = arith.constant 0 : index
    %c0_89 = arith.constant 0 : index
    %287 = vector.load %arg5[%c0_88, %c0_89] : memref<1x128xf32, #tpu.memory_space<vmem>>, vector<1x128xf32>
    %288 = vector.broadcast %287 : vector<1x128xf32> to vector<64x128xf32>
    %289 = arith.mulf %286, %288 : vector<64x128xf32>
    %cst_90 = arith.constant dense<0.000000e+00> : vector<64xf32>
    %290 = vector.multi_reduction <add>, %289, %cst_90 [1] : vector<64x128xf32> to vector<64xf32>
    %291 = vector.shape_cast %290 : vector<64xf32> to vector<64x1xf32>
    %c0_91 = arith.constant 0 : index
    %c0_92 = arith.constant 0 : index
    %292 = vector.load %arg6[%c0_91, %c0_92] : memref<1x1xf32, #tpu.memory_space<vmem>>, vector<1x1xf32>
    %293 = vector.broadcast %292 : vector<1x1xf32> to vector<64x1xf32>
    %294 = arith.addf %291, %293 : vector<64x1xf32>
    %c0_93 = arith.constant 0 : index
    %c0_94 = arith.constant 0 : index
    %295 = vector.load %arg9[%c0_93, %c0_94] : memref<64x1xf32, #tpu.memory_space<vmem>>, vector<64x1xf32>
    tpu.vector_store %arg9[%c0_93, %c0_94], %294 {strides = array<i32>} : memref<64x1xf32, #tpu.memory_space<vmem>>, vector<64x1xf32>,
    return
  }
  func.func @transform_0(%arg0: i32) -> (i32, i32) {
    %c0_i32 = arith.constant 0 : i32
    %c0_i32_0 = arith.constant 0 : i32
    %c0_i32_1 = arith.constant 0 : i32
    return %c0_i32, %c0_i32_0 : i32, i32
  }
  func.func @transform_1(%arg0: i32) -> (i32, i32) {
    %c0_i32 = arith.constant 0 : i32
    %c0_i32_0 = arith.constant 0 : i32
    %c0_i32_1 = arith.constant 0 : i32
    return %c0_i32, %c0_i32_0 : i32, i32
  }
  func.func @transform_2(%arg0: i32) -> (i32, i32) {
    %c0_i32 = arith.constant 0 : i32
    %c0_i32_0 = arith.constant 0 : i32
    %c0_i32_1 = arith.constant 0 : i32
    return %c0_i32, %c0_i32_0 : i32, i32
  }
  func.func @transform_3(%arg0: i32) -> (i32, i32) {
    %c0_i32 = arith.constant 0 : i32
    %c0_i32_0 = arith.constant 0 : i32
    %c0_i32_1 = arith.constant 0 : i32
    return %c0_i32, %c0_i32_0 : i32, i32
  }
  func.func @transform_4(%arg0: i32) -> (i32, i32) {
    %c0_i32 = arith.constant 0 : i32
    %c0_i32_0 = arith.constant 0 : i32
    %c0_i32_1 = arith.constant 0 : i32
    return %c0_i32, %c0_i32_0 : i32, i32
  }
  func.func @transform_5(%arg0: i32) -> (i32, i32) {
    %c0_i32 = arith.constant 0 : i32
    %c0_i32_0 = arith.constant 0 : i32
    %c0_i32_1 = arith.constant 0 : i32
    return %c0_i32, %c0_i32_0 : i32, i32
  }
  func.func @transform_6(%arg0: i32) -> (i32, i32) {
    %c0_i32 = arith.constant 0 : i32
    %c0_i32_0 = arith.constant 0 : i32
    %c0_i32_1 = arith.constant 0 : i32
    return %c0_i32, %c0_i32_0 : i32, i32
  }
  func.func @transform_7(%arg0: i32) -> (i32, i32) {
    %c0_i32 = arith.constant 0 : i32
    %c0_i32_0 = arith.constant 0 : i32
    %c0_i32_1 = arith.constant 0 : i32
    return %c0_i32, %c0_i32_0 : i32, i32
  }
  func.func @transform_8(%arg0: i32) -> (i32, i32) {
    %c0_i32 = arith.constant 0 : i32
    %c0_i32_0 = arith.constant 0 : i32
    %c0_i32_1 = arith.constant 0 : i32
    return %c0_i32, %c0_i32_0 : i32, i32
  }
  func.func @transform_9(%arg0: i32) -> (i32, i32) {
    %c0_i32 = arith.constant 0 : i32
    %c0_i32_0 = arith.constant 0 : i32
    %c0_i32_1 = arith.constant 0 : i32
    return %c0_i32, %c0_i32_0 : i32, i32
  }
  func.func @transform_10(%arg0: i32) -> (i32, i32) {
    %c0_i32 = arith.constant 0 : i32
    %c0_i32_0 = arith.constant 0 : i32
    %c0_i32_1 = arith.constant 0 : i32
    return %c0_i32, %c0_i32_0 : i32, i32
  }
}

</mosaic_0001>

<bundles_post_ra>
// kernel: tpu_custom_call.1
= control target key start
LH: loop header
LB: loop body
LE: loop exit
PB: predicated region body
PF: predicated region fallthrough
CT: control target
= control target key end

     0   :  { %s3615_s0 = inlined_call_operand.vmem [shape: f32[64,1], index: 0, kind: input, shape index: {}]   ;;  %s3616_s1 = inlined_call_operand.vmem [shape: f32[1,512], index: 1, kind: input, shape index: {}]   ;;  %s3617_s2 = inlined_call_operand.hbm [shape: f32[128,512], index: 2, kind: input, shape index: {}]   ;;  %s3618_s3 = inlined_call_operand.vmem [shape: f32[1,512], index: 3, kind: input, shape index: {}]   ;;  %s3619_s4 = inlined_call_operand.vmem [shape: f32[1,128], index: 4, kind: input, shape index: {}]   ;;  %s3620_s5 = inlined_call_operand.<no memory space> [shape: f32[1,1], index: 5, kind: input, shape index: {}]   ;;  %s3621_s6 = inlined_call_operand.vmem [shape: f32[8,128], index: 6, kind: input, shape index: {}]   ;;  %s3622_s7 = inlined_call_operand.vmem [shape: f32[8,128], index: 7, kind: input, shape index: {}]   ;;  %s3623_s8 = inlined_call_operand.vmem [shape: f32[64,1], index: 8, kind: output, shape index: {0}]   ;;  %s3624_s9 = inlined_call_operand.hbm [shape: f32[8,128], index: 9, kind: output, shape index: {1}]   ;;  %s3625_s10 = inlined_call_operand.hbm [shape: f32[8,128], index: 10, kind: output, shape index: {2}]  }
   0x1   :  { %v16_v0 = vstv %s3620_s5 }
   0x2   :  { %17 = vst [vmem:[#allocation4] sm:$0x1] %v16_v0 }
   0x3   :  { %18 = vsyncpa [#allocation6], 0 }
   0x4   :  { %19 = vsyncpa [#allocation7], 0 }
   0x5   :  { %20 = vsyncpa [#allocation10], 0  ;;  %s29_s17 = sshll.u32 %s3617_s2, 4  ;;  %s2349_s18 = smov [#allocation5]   ;;  %s30_s17 = int_to_ptr.hbm [resolvable:$true] %s29_s17 }
   0x6   :  { %s31_s19 = sshll.u32 %s2349_s18, 4  ;;  %s2350_s20 = smov 512   ;;  %s32_s19 = int_to_ptr.vmem [resolvable:$true] %s31_s19 }
   0x7   :  { %s2351_s21 = smov 32  }
   0x8   :  { %37 = dma.hbm_to_vmem [thread:$0]  %s30_s17, 8192, %s32_s19, [#allocation6], %s2350_s20, %s2350_s20, %s2351_s21  }
   0x9   :  { %2343 = dma.done.wait [#allocation6], 8192  }
   0xa   :  { %2344 = vsyncadd [#allocation6], 4294959104  ;;  %v2352_v1 = vmov 0   ;;  %v2416_v2 = vld [vmem:[#allocation5 + $0x1e0] sm:$0xff]  ;;  %v2418_v3 = vld [vmem:[#allocation5 + $0x1e8] sm:$0xff]  ;;  %vm2035_vm12 = vcmask 7168  }
   0xb   :  { %2118 = vset.pattern.permute.xlu0 %v2352_v1  ;;  %2120 = vset.pattern.permute.xlu2 %v2352_v1  ;;  %v2420_v4 = vld [vmem:[#allocation5 + $0x1f0] sm:$0xff]  ;;  %v2424_v5 = vld [vmem:[#allocation5 + $0x1f8] sm:$0xff]  ;;  %v2426_v6 = vld [vmem:[#allocation5 + $0x1c0] sm:$0xff]  ;;  %s2353_s14 = smov [#allocation8]   ;;  %s2053_s15 = sshll.u32 %s3624_s9, 4  ;;  %s2054_s15 = int_to_ptr.hbm [resolvable:$true] %s2053_s15 }
   0xc   :  { %2119 = vset.pattern.permute.xlu1 %v2352_v1  ;;  %289 = vmatpush.msra.mxu0 %v2416_v2  ;;  %v2428_v7 = vld [vmem:[#allocation5 + $0x1c8] sm:$0xff]  ;;  %v2432_v8 = vld [vmem:[#allocation5 + $0x1d0] sm:$0xff]  ;;  %v2434_v9 = vld [vmem:[#allocation5 + $0x1d8] sm:$0xff]  ;;  %s2354_s16 = smov [#allocation9]   ;;  %s2064_s20 = sshll.u32 %s3625_s10, 4  ;;  %s2065_s20 = int_to_ptr.hbm [resolvable:$true] %s2064_s20 }
   0xd   :  { %309 = vmatpush.msra.mxu1 %v2418_v3  ;;  %329 = vmatpush.msra.mxu2 %v2420_v4  ;;  %v2436_v10 = vld [vmem:[#allocation5 + $0x1a0] sm:$0xff]  ;;  %v2440_v11 = vld [vmem:[#allocation5 + $0x1a8] sm:$0xff]  ;;  %v2442_v12 = vld [vmem:[#allocation5 + $0x1b0] sm:$0xff]  ;;  %s2062_s17 = sshll.u32 %s2354_s16, 4  ;;  %s2063_s17 = int_to_ptr.vmem [resolvable:$true] %s2062_s17 }
   0xe   :  { %349 = vmatpush.msra.mxu3 %v2424_v5  ;;  %290 = vmatpush.msra.mxu0 %v2426_v6  ;;  %v2444_v13 = vld [vmem:[#allocation5 + $0x1b8] sm:$0xff]  ;;  %v2448_v14 = vld [vmem:[#allocation5 + $0x180] sm:$0xff]  ;;  %v2450_v15 = vld [vmem:[#allocation5 + $0x188] sm:$0xff] }
   0xf   :  { %310 = vmatpush.msra.mxu1 %v2428_v7  ;;  %330 = vmatpush.msra.mxu2 %v2432_v8  ;;  %v2454_v16 = vld [vmem:[#allocation5 + $0x190] sm:$0xff]  ;;  %v2456_v17 = vld [vmem:[#allocation5 + $0x198] sm:$0xff]  ;;  %v2460_v18 = vld [vmem:[#allocation5 + $0x160] sm:$0xff] }
  0x10   :  { %350 = vmatpush.msra.mxu3 %v2434_v9  ;;  %291 = vmatpush.msra.mxu0 %v2436_v10  ;;  %v2462_v19 = vld [vmem:[#allocation5 + $0x168] sm:$0xff]  ;;  %v2466_v20 = vld [vmem:[#allocation5 + $0x170] sm:$0xff]  ;;  %v2468_v21 = vld [vmem:[#allocation5 + $0x178] sm:$0xff] }
  0x11   :  { %311 = vmatpush.msra.mxu1 %v2440_v11  ;;  %331 = vmatpush.msra.mxu2 %v2442_v12  ;;  %v2472_v22 = vld [vmem:[#allocation5 + $0x140] sm:$0xff]  ;;  %v2474_v23 = vld [vmem:[#allocation5 + $0x148] sm:$0xff]  ;;  %v2478_v24 = vld [vmem:[#allocation5 + $0x150] sm:$0xff] }
  0x12   :  { %351 = vmatpush.msra.mxu3 %v2444_v13  ;;  %292 = vmatpush.msra.mxu0 %v2448_v14  ;;  %v2480_v25 = vld [vmem:[#allocation5 + $0x158] sm:$0xff]  ;;  %v2484_v26 = vld [vmem:[#allocation5 + $0x120] sm:$0xff]  ;;  %v2486_v27 = vld [vmem:[#allocation5 + $0x128] sm:$0xff] }
  0x13   :  { %312 = vmatpush.msra.mxu1 %v2450_v15  ;;  %332 = vmatpush.msra.mxu2 %v2454_v16  ;;  %v2490_v28 = vld [vmem:[#allocation5 + $0x130] sm:$0xff]  ;;  %v2492_v29 = vld [vmem:[#allocation5 + $0x138] sm:$0xff]  ;;  %v2496_v30 = vld [vmem:[#allocation5 + $0x100] sm:$0xff] }
  0x14   :  { %352 = vmatpush.msra.mxu3 %v2456_v17  ;;  %293 = vmatpush.msra.mxu0 %v2460_v18  ;;  %v2498_v31 = vld [vmem:[#allocation5 + $0x108] sm:$0xff]  ;;  %v2502_v32 = vld [vmem:[#allocation5 + $0x110] sm:$0xff]  ;;  %v2504_v33 = vld [vmem:[#allocation5 + $0x118] sm:$0xff] }
  0x15   :  { %313 = vmatpush.msra.mxu1 %v2462_v19  ;;  %333 = vmatpush.msra.mxu2 %v2466_v20  ;;  %v2508_v34 = vld [vmem:[#allocation5 + $0xe0] sm:$0xff]  ;;  %v2510_v35 = vld [vmem:[#allocation5 + $0xe8] sm:$0xff]  ;;  %v2514_v36 = vld [vmem:[#allocation5 + $0xf0] sm:$0xff] }
  0x16   :  { %353 = vmatpush.msra.mxu3 %v2468_v21  ;;  %294 = vmatpush.msra.mxu0 %v2472_v22  ;;  %v2516_v37 = vld [vmem:[#allocation5 + $0xf8] sm:$0xff]  ;;  %v2520_v38 = vld [vmem:[#allocation5 + $0xc0] sm:$0xff]  ;;  %v2522_v39 = vld [vmem:[#allocation5 + $0xc8] sm:$0xff] }
  0x17   :  { %314 = vmatpush.msra.mxu1 %v2474_v23  ;;  %334 = vmatpush.msra.mxu2 %v2478_v24  ;;  %v2526_v40 = vld [vmem:[#allocation5 + $0xd0] sm:$0xff]  ;;  %v2528_v41 = vld [vmem:[#allocation5 + $0xd8] sm:$0xff]  ;;  %v2532_v42 = vld [vmem:[#allocation5 + $0xa0] sm:$0xff] }
  0x18   :  { %354 = vmatpush.msra.mxu3 %v2480_v25  ;;  %295 = vmatpush.msra.mxu0 %v2484_v26  ;;  %v2534_v43 = vld [vmem:[#allocation5 + $0xa8] sm:$0xff]  ;;  %v2538_v44 = vld [vmem:[#allocation5 + $0xb0] sm:$0xff]  ;;  %v2540_v45 = vld [vmem:[#allocation5 + $0xb8] sm:$0xff] }
  0x19   :  { %315 = vmatpush.msra.mxu1 %v2486_v27  ;;  %335 = vmatpush.msra.mxu2 %v2490_v28  ;;  %v2544_v46 = vld [vmem:[#allocation5 + $0x80] sm:$0xff]  ;;  %v2546_v47 = vld [vmem:[#allocation5 + $0x88] sm:$0xff]  ;;  %v2550_v48 = vld [vmem:[#allocation5 + $0x90] sm:$0xff] }
  0x1a   :  { %355 = vmatpush.msra.mxu3 %v2492_v29  ;;  %296 = vmatpush.msra.mxu0 %v2496_v30  ;;  %v2552_v49 = vld [vmem:[#allocation5 + $0x98] sm:$0xff]  ;;  %v2559_v51 = vld [vmem:[#allocation5 + $0x60] sm:$0xff]  ;;  %v2563_v52 = vld [vmem:[#allocation5 + $0x68] sm:$0xff] }
  0x1b   :  { %316 = vmatpush.msra.mxu1 %v2498_v31  ;;  %336 = vmatpush.msra.mxu2 %v2502_v32  ;;  %v52_v50 = vld [vmem:[%s3615_s0] sm:$0xff]  ;;  %v2565_v53 = vld [vmem:[#allocation5 + $0x70] sm:$0xff]  ;;  %v2574_v56 = vld [vmem:[#allocation5 + $0x48] sm:$0xff] }
  0x1c   :  { %356 = vmatpush.msra.mxu3 %v2504_v33  ;;  %297 = vmatpush.msra.mxu0 %v2508_v34  ;;  %v2569_v54 = vld [vmem:[#allocation5 + $0x78] sm:$0xff]  ;;  %v2571_v55 = vld [vmem:[#allocation5 + $0x40] sm:$0xff]  ;;  %v2576_v57 = vld [vmem:[#allocation5 + $0x50] sm:$0xff] }
  0x1d   :  { %317 = vmatpush.msra.mxu1 %v2510_v35  ;;  %337 = vmatpush.msra.mxu2 %v2514_v36  ;;  %3704 = vst [vmem:[#allocation14_spill] sm:$0xff] %v2576_v57  ;;  %v2580_v58 = vld [vmem:[#allocation5 + $0x58] sm:$0xff]  ;;  %v2582_v59 = vld [vmem:[#allocation5 + $0x20] sm:$0xff]  ;;  %v2586_v60 = vld [vmem:[#allocation5 + $0x28] sm:$0xff] }
  0x1e   :  { %357 = vmatpush.msra.mxu3 %v2516_v37  ;;  %298 = vmatpush.msra.mxu0 %v2520_v38  ;;  %3705 = vst [vmem:[#allocation15_spill] sm:$0xff] %v2582_v59  ;;  %v2588_v61 = vld [vmem:[#allocation5 + $0x30] sm:$0xff]  ;;  %v2592_v62 = vld [vmem:[#allocation5 + $0x38] sm:$0xff]  ;;  %v2594_v63 = vld [vmem:[#allocation5] sm:$0xff] }
  0x1f   :  { %318 = vmatpush.msra.mxu1 %v2522_v39  ;;  %338 = vmatpush.msra.mxu2 %v2526_v40  ;;  %v2598_v0 = vld [vmem:[#allocation5 + $0x8] sm:$0xff]  ;;  %v2600_v1 = vld [vmem:[#allocation5 + $0x10] sm:$0xff] }
  0x20   :  { %358 = vmatpush.msra.mxu3 %v2528_v41  ;;  %299 = vmatpush.msra.mxu0 %v2532_v42  ;;  %3706 = vst [vmem:[#allocation16_spill] sm:$0xff] %v2598_v0 }
  0x21   :  { %319 = vmatpush.msra.mxu1 %v2534_v43  ;;  %339 = vmatpush.msra.mxu2 %v2538_v44 }
  0x22   :  { %359 = vmatpush.msra.mxu3 %v2540_v45  ;;  %300 = vmatpush.msra.mxu0 %v2544_v46 }
  0x23   :  { %320 = vmatpush.msra.mxu1 %v2546_v47  ;;  %340 = vmatpush.msra.mxu2 %v2550_v48 }
  0x24   :  { %360 = vmatpush.msra.mxu3 %v2552_v49  ;;  %63 = vperm.xlu0 %2118, %v52_v50   ;;  %v2604_v50 = vld [vmem:[#allocation5 + $0x18] sm:$0xff] }
  0x25   :  { %301 = vmatpush.msra.mxu0 %v2559_v51  ;;  %321 = vmatpush.msra.mxu1 %v2563_v52 }
  0x26   :  { %341 = vmatpush.msra.mxu2 %v2565_v53  ;;  %361 = vmatpush.msra.mxu3 %v2569_v54 }
  0x27   :  { %302 = vmatpush.msra.mxu0 %v2571_v55  ;;  %322 = vmatpush.msra.mxu1 %v2574_v56 }
  0x28   :  { %342 = vmatpush.msra.mxu2 %v2576_v57  ;;  %362 = vmatpush.msra.mxu3 %v2580_v58  ;;  %v53_v57 = vld [vmem:[%s3615_s0 + $0x8] sm:$0xff] }
  0x29   :  { %303 = vmatpush.msra.mxu0 %v2582_v59  ;;  %323 = vmatpush.msra.mxu1 %v2586_v60  ;;  %v216_v59 = vld [vmem:[%s3621_s6] sm:$0xff] }
  0x2a   :  { %343 = vmatpush.msra.mxu2 %v2588_v61  ;;  %363 = vmatpush.msra.mxu3 %v2592_v62 }
  0x2b   :  { %304 = vmatpush.msra.mxu0 %v2594_v63  ;;  %324 = vmatpush.msra.mxu1 %v2598_v0  ;;  %v58_v0 = vld [vmem:[%s3615_s0 + $0x30] sm:$0xff] }
  0x2c   :  { %344 = vmatpush.msra.mxu2 %v2600_v1  ;;  %364 = vmatpush.msra.mxu3 %v2604_v50 }
  0x2d   :  { %68 = vperm.xlu0 %2118, %v53_v57   ;;  %305 = vmatmul.f32.vlgmr.msra.gmra.mxu0 %v216_v59  ;;  %v3707_v57 = vld [vmem:[#allocation14_spill] sm:$0xff] }
  0x2e   :  { %325 = vmatmul.f32.vlgmr.msra.gmra.mxu1 %v216_v59  ;;  %345 = vmatmul.f32.vlgmr.msra.gmra.mxu2 %v216_v59 }
  0x2f   :  { %365 = vmatmul.f32.vlgmr.msra.gmra.mxu3 %v216_v59  ;;  %508 = vmatpush.msrb.mxu0 %v2416_v2  ;;  %v3708_v59 = vld [vmem:[#allocation15_spill] sm:$0xff] }
  0x30   :  { %528 = vmatpush.msrb.mxu1 %v2418_v3  ;;  %548 = vmatpush.msrb.mxu2 %v2420_v4 }
  0x31   :  { %568 = vmatpush.msrb.mxu3 %v2424_v5  ;;  %509 = vmatpush.msrb.mxu0 %v2426_v6 }
  0x32   :  { %529 = vmatpush.msrb.mxu1 %v2428_v7  ;;  %549 = vmatpush.msrb.mxu2 %v2432_v8 }
  0x33   :  { %569 = vmatpush.msrb.mxu3 %v2434_v9  ;;  %510 = vmatpush.msrb.mxu0 %v2436_v10 }
  0x34   :  { %530 = vmatpush.msrb.mxu1 %v2440_v11  ;;  %550 = vmatpush.msrb.mxu2 %v2442_v12 }
  0x35   :  { %93 = vperm.xlu0 %2118, %v58_v0   ;;  %570 = vmatpush.msrb.mxu3 %v2444_v13  ;;  %v3709_v0 = vld [vmem:[#allocation16_spill] sm:$0xff] }
  0x36   :  { %511 = vmatpush.msrb.mxu0 %v2448_v14  ;;  %531 = vmatpush.msrb.mxu1 %v2450_v15 }
  0x37   :  { %551 = vmatpush.msrb.mxu2 %v2454_v16  ;;  %571 = vmatpush.msrb.mxu3 %v2456_v17 }
  0x38   :  { %512 = vmatpush.msrb.mxu0 %v2460_v18  ;;  %532 = vmatpush.msrb.mxu1 %v2462_v19 }
  0x39   :  { %552 = vmatpush.msrb.mxu2 %v2466_v20  ;;  %572 = vmatpush.msrb.mxu3 %v2468_v21 }
  0x3a   :  { %513 = vmatpush.msrb.mxu0 %v2472_v22  ;;  %533 = vmatpush.msrb.mxu1 %v2474_v23 }
  0x3b   :  { %553 = vmatpush.msrb.mxu2 %v2478_v24  ;;  %573 = vmatpush.msrb.mxu3 %v2480_v25 }
  0x3c   :  { %514 = vmatpush.msrb.mxu0 %v2484_v26  ;;  %534 = vmatpush.msrb.mxu1 %v2486_v27 }
  0x3d   :  { %554 = vmatpush.msrb.mxu2 %v2490_v28  ;;  %574 = vmatpush.msrb.mxu3 %v2492_v29 }
  0x3e   :  { %515 = vmatpush.msrb.mxu0 %v2496_v30  ;;  %535 = vmatpush.msrb.mxu1 %v2498_v31 }
  0x3f   :  { %555 = vmatpush.msrb.mxu2 %v2502_v32  ;;  %575 = vmatpush.msrb.mxu3 %v2504_v33 }
  0x40   :  { %516 = vmatpush.msrb.mxu0 %v2508_v34  ;;  %536 = vmatpush.msrb.mxu1 %v2510_v35 }
  0x41   :  { %556 = vmatpush.msrb.mxu2 %v2514_v36  ;;  %576 = vmatpush.msrb.mxu3 %v2516_v37 }
  0x42   :  { %517 = vmatpush.msrb.mxu0 %v2520_v38  ;;  %537 = vmatpush.msrb.mxu1 %v2522_v39 }
  0x43   :  { %557 = vmatpush.msrb.mxu2 %v2526_v40  ;;  %577 = vmatpush.msrb.mxu3 %v2528_v41 }
  0x44   :  { %518 = vmatpush.msrb.mxu0 %v2532_v42  ;;  %538 = vmatpush.msrb.mxu1 %v2534_v43 }
  0x45   :  { %558 = vmatpush.msrb.mxu2 %v2538_v44  ;;  %578 = vmatpush.msrb.mxu3 %v2540_v45 }
  0x46   :  { %519 = vmatpush.msrb.mxu0 %v2544_v46  ;;  %539 = vmatpush.msrb.mxu1 %v2546_v47 }
  0x47   :  { %559 = vmatpush.msrb.mxu2 %v2550_v48  ;;  %579 = vmatpush.msrb.mxu3 %v2552_v49 }
  0x48   :  { %520 = vmatpush.msrb.mxu0 %v2559_v51  ;;  %540 = vmatpush.msrb.mxu1 %v2563_v52 }
  0x49   :  { %560 = vmatpush.msrb.mxu2 %v2565_v53  ;;  %580 = vmatpush.msrb.mxu3 %v2569_v54 }
  0x4a   :  { %521 = vmatpush.msrb.mxu0 %v2571_v55  ;;  %541 = vmatpush.msrb.mxu1 %v2574_v56 }
  0x4b   :  { %561 = vmatpush.msrb.mxu2 %v3707_v57  ;;  %581 = vmatpush.msrb.mxu3 %v2580_v58 }
  0x4c   :  { %522 = vmatpush.msrb.mxu0 %v3708_v59  ;;  %542 = vmatpush.msrb.mxu1 %v2586_v60 }
  0x4d   :  { %562 = vmatpush.msrb.mxu2 %v2588_v61  ;;  %582 = vmatpush.msrb.mxu3 %v2592_v62 }
  0x4e   :  { %523 = vmatpush.msrb.mxu0 %v2594_v63  ;;  %543 = vmatpush.msrb.mxu1 %v3709_v0 }
  0x4f   :  { %563 = vmatpush.msrb.mxu2 %v2600_v1  ;;  %583 = vmatpush.msrb.mxu3 %v2604_v50 }
  0x50   :  { %728 = vmatpush.msra.mxu0 %v2416_v2  ;;  %748 = vmatpush.msra.mxu1 %v2418_v3  ;;  %v56_v2 = vld [vmem:[%s3615_s0 + $0x20] sm:$0xff]  ;;  %v57_v3 = vld [vmem:[%s3615_s0 + $0x28] sm:$0xff] }
  0x51   :  { %768 = vmatpush.msra.mxu2 %v2420_v4  ;;  %788 = vmatpush.msra.mxu3 %v2424_v5  ;;  %v60_v4 = vld [vmem:[%s3616_s1] sm:$0xf]  ;;  %s2051_s1 = sshll.u32 %s2353_s14, 4  ;;  %s2052_s1 = int_to_ptr.vmem [resolvable:$true] %s2051_s1 }
  0x52   :  { %729 = vmatpush.msra.mxu0 %v2426_v6  ;;  %749 = vmatpush.msra.mxu1 %v2428_v7  ;;  %v2757_v5 = vperm.slane %v60_v4, 0  ;;  %v2759_v6 = vperm.slane %v60_v4, 1  ;;  %v142_v7 = vld [vmem:[%s3618_s3] sm:$0xf] }
  0x53   :  { %769 = vmatpush.msra.mxu2 %v2432_v8  ;;  %789 = vmatpush.msra.mxu3 %v2434_v9 }
  0x54   :  { %730 = vmatpush.msra.mxu0 %v2436_v10  ;;  %750 = vmatpush.msra.mxu1 %v2440_v11  ;;  %3710 = vst [vmem:[#allocation14_spill] sm:$0xff] %v2757_v5  ;;  %v2765_v10 = vperm.slane %v142_v7, 0 }
  0x55   :  { %770 = vmatpush.msra.mxu2 %v2442_v12  ;;  %790 = vmatpush.msra.mxu3 %v2444_v13  ;;  %3711 = vst [vmem:[#allocation15_spill] sm:$0xff] %v2759_v6  ;;  %v2768_v12 = vperm.slane %v142_v7, 1 }
  0x56   :  { %731 = vmatpush.msra.mxu0 %v2448_v14  ;;  %751 = vmatpush.msra.mxu1 %v2450_v15  ;;  %3712 = vst [vmem:[#allocation16_spill] sm:$0xff] %v2765_v10  ;;  %v2772_v15 = vperm.slane %v60_v4, 3 }
  0x57   :  { %771 = vmatpush.msra.mxu2 %v2454_v16  ;;  %791 = vmatpush.msra.mxu3 %v2456_v17  ;;  %3713 = vst [vmem:[#allocation17_spill] sm:$0xff] %v2768_v12 }
  0x58   :  { %732 = vmatpush.msra.mxu0 %v2460_v18  ;;  %752 = vmatpush.msra.mxu1 %v2462_v19  ;;  %3714 = vst [vmem:[#allocation18_spill] sm:$0xff] %v2772_v15 }
  0x59   :  { %772 = vmatpush.msra.mxu2 %v2466_v20  ;;  %792 = vmatpush.msra.mxu3 %v2468_v21  ;;  %v2775_v21 = vperm.slane %v142_v7, 3 }
  0x5a   :  { %733 = vmatpush.msra.mxu0 %v2472_v22  ;;  %753 = vmatpush.msra.mxu1 %v2474_v23 }
  0x5b   :  { %773 = vmatpush.msra.mxu2 %v2478_v24  ;;  %793 = vmatpush.msra.mxu3 %v2480_v25  ;;  %3715 = vst [vmem:[#allocation19_spill] sm:$0xff] %v2775_v21 }
  0x5c   :  { %734 = vmatpush.msra.mxu0 %v2484_v26  ;;  %754 = vmatpush.msra.mxu1 %v2486_v27  ;;  %v2778_v27 = vperm.slane %v60_v4, 2 }
  0x5d   :  { %774 = vmatpush.msra.mxu2 %v2490_v28  ;;  %794 = vmatpush.msra.mxu3 %v2492_v29 }
  0x5e   :  { %735 = vmatpush.msra.mxu0 %v2496_v30  ;;  %755 = vmatpush.msra.mxu1 %v2498_v31  ;;  %3716 = vst [vmem:[#allocation20_spill] sm:$0xff] %v2778_v27 }
  0x5f   :  { %775 = vmatpush.msra.mxu2 %v2502_v32  ;;  %795 = vmatpush.msra.mxu3 %v2504_v33 }
  0x60   :  { %736 = vmatpush.msra.mxu0 %v2508_v34  ;;  %756 = vmatpush.msra.mxu1 %v2510_v35  ;;  %v2781_v34 = vperm.slane %v142_v7, 2 }
  0x61   :  { %776 = vmatpush.msra.mxu2 %v2514_v36  ;;  %796 = vmatpush.msra.mxu3 %v2516_v37 }
  0x62   :  { %737 = vmatpush.msra.mxu0 %v2520_v38  ;;  %757 = vmatpush.msra.mxu1 %v2522_v39  ;;  %3717 = vst [vmem:[#allocation21_spill] sm:$0xff] %v2781_v34 }
  0x63   :  { %777 = vmatpush.msra.mxu2 %v2526_v40  ;;  %797 = vmatpush.msra.mxu3 %v2528_v41 }
  0x64   :  { %738 = vmatpush.msra.mxu0 %v2532_v42  ;;  %758 = vmatpush.msra.mxu1 %v2534_v43 }
  0x65   :  { %778 = vmatpush.msra.mxu2 %v2538_v44  ;;  %798 = vmatpush.msra.mxu3 %v2540_v45 }
  0x66   :  { %739 = vmatpush.msra.mxu0 %v2544_v46  ;;  %759 = vmatpush.msra.mxu1 %v2546_v47 }
  0x67   :  { %779 = vmatpush.msra.mxu2 %v2550_v48  ;;  %799 = vmatpush.msra.mxu3 %v2552_v49 }
  0x68   :  { %740 = vmatpush.msra.mxu0 %v2559_v51  ;;  %760 = vmatpush.msra.mxu1 %v2563_v52 }
  0x69   :  { %780 = vmatpush.msra.mxu2 %v2565_v53  ;;  %800 = vmatpush.msra.mxu3 %v2569_v54 }
  0x6a   :  { %741 = vmatpush.msra.mxu0 %v2571_v55  ;;  %761 = vmatpush.msra.mxu1 %v2574_v56 }
  0x6b   :  { %781 = vmatpush.msra.mxu2 %v3707_v57  ;;  %801 = vmatpush.msra.mxu3 %v2580_v58 }
  0x6c   :  { %742 = vmatpush.msra.mxu0 %v3708_v59  ;;  %762 = vmatpush.msra.mxu1 %v2586_v60 }
  0x6d   :  { %782 = vmatpush.msra.mxu2 %v2588_v61  ;;  %802 = vmatpush.msra.mxu3 %v2592_v62  ;;  %v217_v61 = vld [vmem:[%s3622_s7] sm:$0xff] }
  0x6e   :  { %743 = vmatpush.msra.mxu0 %v2594_v63  ;;  %763 = vmatpush.msra.mxu1 %v3709_v0 }
  0x6f   :  { %783 = vmatpush.msra.mxu2 %v2600_v1  ;;  %803 = vmatpush.msra.mxu3 %v2604_v50 }
  0x70   :  { %83 = vperm.xlu2 %2120, %v56_v2  }
  0x78   :  { %88 = vperm.xlu2 %2120, %v57_v3  }
  0x96   :  { %v64_v8 = vpop.permute.xlu0 %63 }
  0x97   :  { %v110_v9 = vmul.f32 %v2757_v5, %v64_v8  ;;  %v111_v11 = vmul.f32 %v2759_v6, %v64_v8  ;;  %v113_v20 = vmul.f32 %v2772_v15, %v64_v8  ;;  %v112_v33 = vmul.f32 %v2778_v27, %v64_v8 }
  0x99   :  { %v152_v13 = vadd.f32 %v2765_v10, %v110_v9  ;;  %v153_v14 = vadd.f32 %v2768_v12, %v111_v11  ;;  %v155_v24 = vadd.f32 %v2775_v21, %v113_v20  ;;  %v154_v37 = vadd.f32 %v2781_v34, %v112_v33 }
  0xaa   :  { %v306_v16 = vpop.f32.mrf.mxu0 }
  0xab   :  { %v326_v17 = vpop.f32.mrf.mxu1  ;;  %v369_v18 = vadd.f32 %v306_v16, %v152_v13 }
  0xac   :  { %v370_v19 = vadd.f32 %v326_v17, %v153_v14 }
  0xad   :  { %v2088_v22 = vmul.f32 -1.442695, %v369_v18  ;;  %v2793_v18 = vld [vmem:[%s3619_s4] ss:$0 sm:$0xff] }
  0xae   :  { %v2089_v23 = vmul.f32 -1.442695, %v370_v19  ;;  %3718 = vst [vmem:[#allocation22_spill] sm:$0xff] %v2793_v18 }
  0xaf   :  { %2123 = vpow2.f32 %v2088_v22 }
  0xb0   :  { %2125 = vpow2.f32 %v2089_v23 }
  0xb1   :  { %v346_v35 = vpop.f32.mrf.mxu2 }
  0xb2   :  { %v366_v25 = vpop.f32.mrf.mxu3  ;;  %v371_v40 = vadd.f32 %v346_v35, %v154_v37 }
  0xb3   :  { %v372_v26 = vadd.f32 %v366_v25, %v155_v24  ;;  %v69_v24 = vpop.permute.xlu0 %68 }
  0xb4   :  { %v114_v25 = vmul.f32 %v2757_v5, %v69_v24 }
  0xb5   :  { %v2090_v28 = vmul.f32 -1.442695, %v372_v26  ;;  %v2124_v29 = vpop.eup %2123  ;;  %v115_v26 = vmul.f32 %v2759_v6, %v69_v24 }
  0xb6   :  { %v2126_v30 = vpop.eup %2125  ;;  %v376_v31 = vadd.f32 1.0, %v2124_v29 }
  0xb7   :  { %2127 = vpow2.f32 %v2090_v28  ;;  %v395_v32 = vadd.f32 1.0, %v2126_v30  ;;  %v2802_v28 = vld [vmem:[#allocation4] ss:$0 sm:$0xff]  ;;  %v156_v30 = vadd.f32 %v2765_v10, %v114_v25 }
  0xb8   :  { %2129 = vrcp.f32 %v376_v31  ;;  %v388_v46 = vand.u32 2147483648, %v376_v31  ;;  %v386_v49 = vand.u32 2147483647, %v376_v31  ;;  %vm382_vm2 = vweird.f32 %v376_v31  ;;  %3721 = vst [vmem:[#allocation25_spill] sm:$0xff] %v2802_v28 }
  0xb9   :  { %2131 = vrcp.f32 %v395_v32  ;;  %v407_v47 = vand.u32 2147483648, %v395_v32  ;;  %v405_v52 = vand.u32 2147483647, %v395_v32  ;;  %vm401_vm3 = vweird.f32 %v395_v32 }
  0xba   :  { %v389_v55 = vor.u32 1.1754944e-38, %v388_v46  ;;  %vm387_vm6 = vcmp.eq.f32.partialorder %v386_v49, 8.507059e+37  ;;  %v55_v46 = vld [vmem:[%s3615_s0 + $0x18] sm:$0xff] }
  0xbb   :  { %v408_v60 = vor.u32 1.1754944e-38, %v407_v47  ;;  %vm406_vm7 = vcmp.eq.f32.partialorder %v405_v52, 8.507059e+37  ;;  %v116_v52 = vmul.f32 %v2778_v27, %v69_v24 }
  0xbd   :  { %v2128_v36 = vpop.eup %2127 }
  0xbe   :  { %v415_v38 = vadd.f32 1.0, %v2128_v36  ;;  %v2130_v39 = vpop.eup %2129 }
  0xbf   :  { %v2132_v41 = vpop.eup %2131  ;;  %v378_v42 = vmul.f32 %v2130_v39, %v376_v31  ;;  %vm383_vm0 = vweird.f32 %v2130_v39  ;;  %v157_v31 = vadd.f32 %v2768_v12, %v115_v26 }
  0xc0   :  { %2133 = vrcp.f32 %v415_v38  ;;  %v397_v43 = vmul.f32 %v2132_v41, %v395_v32  ;;  %vm402_vm1 = vweird.f32 %v2132_v41  ;;  %vm384_vm4 = vmor %vm382_vm2, %vm383_vm0  ;;  %v427_v8 = vand.u32 2147483648, %v415_v38 }
  0xc1   :  { %v379_v44 = vsub.f32 1.0, %v378_v42  ;;  %2135 = vtanh.f32 %v371_v40  ;;  %vm403_vm5 = vmor %vm401_vm3, %vm402_vm1  ;;  %vm421_vm9 = vweird.f32 %v415_v38  ;;  %v425_v9 = vand.u32 2147483647, %v415_v38 }
  0xc2   :  { %v398_v45 = vsub.f32 1.0, %v397_v43  ;;  %v428_v13 = vor.u32 1.1754944e-38, %v427_v8 }
  0xc3   :  { %v380_v48 = vmul.f32 %v2130_v39, %v379_v44  ;;  %vm426_vm11 = vcmp.eq.f32.partialorder %v425_v9, 8.507059e+37 }
  0xc4   :  { %v399_v51 = vmul.f32 %v2132_v41, %v398_v45 }
  0xc5   :  { %v381_v54 = vadd.f32 %v2130_v39, %v380_v48 }
  0xc6   :  { %v2134_v53 = vpop.eup %2133  ;;  %v400_v56 = vadd.f32 %v2132_v41, %v399_v51 }
  0xc7   :  { %v417_v58 = vmul.f32 %v2134_v53, %v415_v38  ;;  %v385_v62 = vsel %vm384_vm4, %v2130_v39, %v381_v54  ;;  %v2136_v63 = vpop.eup %2135  ;;  %vm422_vm8 = vweird.f32 %v2134_v53  ;;  %v117_v38 = vmul.f32 %v2772_v15, %v69_v24 }
  0xc8   :  { %v390_v1 = vsel %vm387_vm6, %v389_v55, %v385_v62  ;;  %v404_v50 = vsel %vm403_vm5, %v2132_v41, %v400_v56  ;;  %vm423_vm10 = vmor %vm421_vm9, %vm422_vm8  ;;  %v54_v41 = vld [vmem:[%s3615_s0 + $0x10] sm:$0xff]  ;;  %v158_v55 = vadd.f32 %v2781_v34, %v116_v52  ;;  %v59_v56 = vld [vmem:[%s3615_s0 + $0x38] sm:$0xff] }
  0xc9   :  { %v418_v57 = vsub.f32 1.0, %v417_v58  ;;  %v409_v59 = vsel %vm406_vm7, %v408_v60, %v404_v50  ;;  %v432_v0 = vmul.f32 %v2136_v63, %v390_v1  ;;  %73 = vperm.xlu1 %2119, %v54_v41   ;;  %v159_v42 = vadd.f32 %v2775_v21, %v117_v38  ;;  %v2849_v52 = vld [vmem:[#allocation5 + $0x1d8] sm:$0xff] }
  0xca   :  { %v431_v2 = vmul.f32 %v409_v59, %v217_v61  ;;  %v2796_v22 = vpop.permute.xlu2 %83 }
  0xcb   :  { %v419_v3 = vmul.f32 %v2134_v53, %v418_v57  ;;  %3719 = vst [vmem:[#allocation23_spill] sm:$0xff] %v2796_v22  ;;  %v2982_v22 = vld [vmem:[#allocation5 + $0x90] sm:$0xff] }
  0xcc   :  { %v2787_v4 = vadd.f32 %v432_v0, %v431_v2  ;;  %3734 = vst [vmem:[#allocation38_spill] sm:$0xff] %v2982_v22 }
  0xcd   :  { %v420_v7 = vadd.f32 %v2134_v53, %v419_v3 }
  0xce   :  { %2137 = vtanh.f32 %v2787_v4 }
  0xcf   :  { %v424_v11 = vsel %vm423_vm10, %v2134_v53, %v420_v7 }
  0xd0   :  { %v429_v16 = vsel %vm426_vm11, %v428_v13, %v424_v11 }
  0xd1   :  { %78 = vperm.xlu1 %2119, %v55_v46   ;;  %v2833_v46 = vld [vmem:[#allocation5 + $0x1f0] sm:$0xff] }
  0xd2   :  { %v2798_v23 = vpop.permute.xlu2 %88 }
  0xd3   :  { %3720 = vst [vmem:[#allocation24_spill] sm:$0xff] %v2798_v23  ;;  %v2980_v23 = vld [vmem:[#allocation5 + $0x88] sm:$0xff] }
  0xd4   :  { %v2138_v14 = vpop.eup %2137  ;;  %3733 = vst [vmem:[#allocation37_spill] sm:$0xff] %v2980_v23 }
  0xd5   :  { %v435_v17 = vmul.f32 %v2138_v14, %v429_v16 }
  0xd7   :  { %524 = vmatmul.f32.vlgmr.msrb.gmra.mxu0 %v435_v17  ;;  %544 = vmatmul.f32.vlgmr.msrb.gmra.mxu1 %v435_v17  ;;  %2139 = vtanh.f32 %v435_v17 }
  0xd8   :  { %564 = vmatmul.f32.vlgmr.msrb.gmra.mxu2 %v435_v17  ;;  %584 = vmatmul.f32.vlgmr.msrb.gmra.mxu3 %v435_v17 }
  0xd9   :  { %98 = vperm.xlu1 %2119, %v59_v56   ;;  %988 = vmatpush.msrb.mxu2 %v2833_v46  ;;  %v2861_v56 = vld [vmem:[#allocation5 + $0x1b8] sm:$0xff] }
  0xdd   :  { %v2140_v19 = vpop.eup %2139 }
  0xde   :  { %v1999_v20 = vmul.f32 %v2140_v19, %v2793_v18 }
  0xe0   :  { %2007 = vadd.xlane.f32.xlu2 %v1999_v20 }
 0x153   :  { %v2008_v29 = vpop.xlane.xlu2 %2007 }
 0x154   :  { %v2027_v32 = vadd.f32 %v2802_v28, %v2008_v29  ;;  %v525_v33 = vpop.f32.mrf.mxu0  ;;  %v545_v35 = vpop.f32.mrf.mxu1 }
 0x155   :  { %v588_v36 = vadd.f32 %v525_v33, %v156_v30  ;;  %v589_v37 = vadd.f32 %v545_v35, %v157_v31 }
 0x156   :  { %2036 = vst.msk [vmem:[%s3623_s8] sm:$0xff] %vm2035_vm12, %v2027_v32 }
 0x157   :  { %v2091_v39 = vmul.f32 -1.442695, %v588_v36  ;;  %v2092_v40 = vmul.f32 -1.442695, %v589_v37 }
 0x159   :  { %2141 = vpow2.f32 %v2091_v39 }
 0x15a   :  { %2143 = vpow2.f32 %v2092_v40 }
 0x15b   :  { %v585_v43 = vpop.f32.mrf.mxu3  ;;  %v565_v53 = vpop.f32.mrf.mxu2 }
 0x15c   :  { %v591_v44 = vadd.f32 %v585_v43, %v159_v42  ;;  %v590_v61 = vadd.f32 %v565_v53, %v158_v55  ;;  %v2853_v53 = vld [vmem:[#allocation5 + $0x1a0] sm:$0xff]  ;;  %v2857_v55 = vld [vmem:[#allocation5 + $0x1b0] sm:$0xff] }
 0x15e   :  { %v2093_v45 = vmul.f32 -1.442695, %v591_v44  ;;  %v2829_v44 = vld [vmem:[#allocation5 + $0x1e0] sm:$0xff] }
 0x15f   :  { %v2142_v47 = vpop.eup %2141  ;;  %948 = vmatpush.msrb.mxu0 %v2829_v44 }
 0x160   :  { %v2144_v48 = vpop.eup %2143  ;;  %v595_v49 = vadd.f32 1.0, %v2142_v47  ;;  %2145 = vpow2.f32 %v2093_v45  ;;  %v2831_v45 = vld [vmem:[#allocation5 + $0x1e8] sm:$0xff]  ;;  %v2837_v47 = vld [vmem:[#allocation5 + $0x1f8] sm:$0xff] }
 0x161   :  { %v614_v51 = vadd.f32 1.0, %v2144_v48  ;;  %968 = vmatpush.msrb.mxu1 %v2831_v45  ;;  %3722 = vst [vmem:[#allocation26_spill] sm:$0xff] %v2837_v47  ;;  %1008 = vmatpush.msrb.mxu3 %v2837_v47  ;;  %v2841_v48 = vld [vmem:[#allocation5 + $0x1c0] sm:$0xff] }
 0x162   :  { %2147 = vrcp.f32 %v595_v49  ;;  %v607_v59 = vand.u32 2147483648, %v595_v49  ;;  %v605_v3 = vand.u32 2147483647, %v595_v49  ;;  %vm601_vm15 = vweird.f32 %v595_v49  ;;  %3723 = vst [vmem:[#allocation27_spill] sm:$0xff] %v2841_v48  ;;  %949 = vmatpush.msrb.mxu0 %v2841_v48 }
 0x163   :  { %2149 = vrcp.f32 %v614_v51  ;;  %v626_v0 = vand.u32 2147483648, %v614_v51  ;;  %v624_v8 = vand.u32 2147483647, %v614_v51  ;;  %vm620_vm0 = vweird.f32 %v614_v51  ;;  %1009 = vmatpush.msrb.mxu3 %v2849_v52 }
 0x164   :  { %v608_v13 = vor.u32 1.1754944e-38, %v607_v59  ;;  %vm606_vm3 = vcmp.eq.f32.partialorder %v605_v3, 8.507059e+37  ;;  %950 = vmatpush.msrb.mxu0 %v2853_v53  ;;  %v2887_v59 = vld [vmem:[#allocation5 + $0x178] sm:$0xff]  ;;  %v2895_v3 = vld [vmem:[#allocation5 + $0x148] sm:$0xff] }
 0x165   :  { %v627_v17 = vor.u32 1.1754944e-38, %v626_v0  ;;  %vm625_vm4 = vcmp.eq.f32.partialorder %v624_v8, 8.507059e+37  ;;  %1010 = vmatpush.msrb.mxu3 %v2861_v56  ;;  %3728 = vst [vmem:[#allocation32_spill] sm:$0xff] %v2887_v59  ;;  %v2889_v0 = vpop.permute.xlu1 %73 }
 0x166   :  { %v2146_v54 = vpop.eup %2145  ;;  %v118_v8 = vmul.f32 %v2757_v5, %v2889_v0  ;;  %v3003_v5 = vld [vmem:[#allocation5 + $0x48] sm:$0xff] }
 0x167   :  { %v634_v58 = vadd.f32 1.0, %v2146_v54  ;;  %v2855_v54 = vld [vmem:[#allocation5 + $0x1a8] sm:$0xff]  ;;  %3741 = vst [vmem:[#allocation45_spill] sm:$0xff] %v3003_v5 }
 0x168   :  { %v2148_v60 = vpop.eup %2147 }
 0x169   :  { %v2150_v62 = vpop.eup %2149  ;;  %v597_v63 = vmul.f32 %v2148_v60, %v595_v49  ;;  %2151 = vrcp.f32 %v634_v58  ;;  %vm602_vm13 = vweird.f32 %v2148_v60  ;;  %v646_v36 = vand.u32 2147483648, %v634_v58  ;;  %v2843_v49 = vld [vmem:[#allocation5 + $0x1c8] sm:$0xff] }
 0x16a   :  { %v616_v1 = vmul.f32 %v2150_v62, %v614_v51  ;;  %2153 = vtanh.f32 %v590_v61  ;;  %vm621_vm14 = vweird.f32 %v2150_v62  ;;  %vm603_vm1 = vmor %vm601_vm15, %vm602_vm13  ;;  %vm640_vm6 = vweird.f32 %v634_v58  ;;  %3724 = vst [vmem:[#allocation28_spill] sm:$0xff] %v2843_v49  ;;  %v2845_v51 = vld [vmem:[#allocation5 + $0x1d0] sm:$0xff]  ;;  %969 = vmatpush.msrb.mxu1 %v2843_v49 }
 0x16b   :  { %v598_v50 = vsub.f32 1.0, %v597_v63  ;;  %vm622_vm2 = vmor %vm620_vm0, %vm621_vm14  ;;  %v644_v37 = vand.u32 2147483647, %v634_v58  ;;  %v647_v39 = vor.u32 1.1754944e-38, %v646_v36  ;;  %989 = vmatpush.msrb.mxu2 %v2845_v51  ;;  %v2869_v61 = vld [vmem:[#allocation5 + $0x190] sm:$0xff]  ;;  %v2877_v63 = vld [vmem:[#allocation5 + $0x160] sm:$0xff] }
 0x16c   :  { %v617_v57 = vsub.f32 1.0, %v616_v1  ;;  %970 = vmatpush.msrb.mxu1 %v2855_v54  ;;  %3726 = vst [vmem:[#allocation30_spill] sm:$0xff] %v2869_v61  ;;  %v2879_v1 = vld [vmem:[#allocation5 + $0x168] sm:$0xff]  ;;  %v2943_v36 = vld [vmem:[#allocation5 + $0xf8] sm:$0xff] }
 0x16d   :  { %v599_v2 = vmul.f32 %v2148_v60, %v598_v50  ;;  %vm645_vm8 = vcmp.eq.f32.partialorder %v644_v37, 8.507059e+37  ;;  %990 = vmatpush.msrb.mxu2 %v2857_v55  ;;  %v2881_v50 = vld [vmem:[#allocation5 + $0x170] sm:$0xff] }
 0x16e   :  { %v618_v7 = vmul.f32 %v2150_v62, %v617_v57  ;;  %v2883_v57 = vpop.permute.xlu0 %93 }
 0x16f   :  { %v2152_v9 = vpop.eup %2151  ;;  %v600_v11 = vadd.f32 %v2148_v60, %v599_v2  ;;  %991 = vmatpush.msrb.mxu2 %v2869_v61  ;;  %3727 = vst [vmem:[#allocation31_spill] sm:$0xff] %v2883_v57  ;;  %v2893_v2 = vld [vmem:[#allocation5 + $0x140] sm:$0xff] }
 0x170   :  { %v619_v14 = vadd.f32 %v2150_v62, %v618_v7  ;;  %v636_v16 = vmul.f32 %v2152_v9, %v634_v58  ;;  %v2154_v20 = vpop.eup %2153  ;;  %vm641_vm5 = vweird.f32 %v2152_v9  ;;  %v2865_v58 = vld [vmem:[#allocation5 + $0x180] sm:$0xff]  ;;  %v2897_v7 = vld [vmem:[#allocation5 + $0x150] sm:$0xff] }
 0x171   :  { %v604_v19 = vsel %vm603_vm1, %v2148_v60, %v600_v11  ;;  %vm642_vm7 = vmor %vm640_vm6, %vm641_vm5  ;;  %v2867_v60 = vld [vmem:[#allocation5 + $0x188] sm:$0xff]  ;;  %951 = vmatpush.msrb.mxu0 %v2865_v58  ;;  %992 = vmatpush.msrb.mxu2 %v2881_v50  ;;  %3729 = vst [vmem:[#allocation33_spill] sm:$0xff] %v2897_v7  ;;  %v2905_v11 = vld [vmem:[#allocation5 + $0x158] sm:$0xff] }
 0x172   :  { %v609_v24 = vsel %vm606_vm3, %v608_v13, %v604_v19  ;;  %v623_v25 = vsel %vm622_vm2, %v2150_v62, %v619_v14  ;;  %v637_v26 = vsub.f32 1.0, %v636_v16  ;;  %3725 = vst [vmem:[#allocation29_spill] sm:$0xff] %v2867_v60  ;;  %971 = vmatpush.msrb.mxu1 %v2867_v60  ;;  %v2873_v62 = vld [vmem:[#allocation5 + $0x198] sm:$0xff]  ;;  %v2909_v13 = vld [vmem:[#allocation5 + $0x120] sm:$0xff]  ;;  %v2911_v14 = vld [vmem:[#allocation5 + $0x128] sm:$0xff] }
 0x173   :  { %v628_v29 = vsel %vm625_vm4, %v627_v17, %v623_v25  ;;  %v651_v30 = vmul.f32 %v2154_v20, %v609_v24  ;;  %1011 = vmatpush.msrb.mxu3 %v2873_v62  ;;  %952 = vmatpush.msrb.mxu0 %v2877_v63  ;;  %3730 = vst [vmem:[#allocation34_spill] sm:$0xff] %v2911_v14  ;;  %v2913_v16 = vld [vmem:[#allocation5 + $0x130] sm:$0xff]  ;;  %v2917_v17 = vld [vmem:[#allocation5 + $0x138] sm:$0xff]  ;;  %v2921_v19 = vld [vmem:[#allocation5 + $0x100] sm:$0xff] }
 0x174   :  { %v650_v31 = vmul.f32 %v628_v29, %v2787_v4  ;;  %v638_v32 = vmul.f32 %v2152_v9, %v637_v26  ;;  %972 = vmatpush.msrb.mxu1 %v2879_v1  ;;  %993 = vmatpush.msrb.mxu2 %v2897_v7  ;;  %3731 = vst [vmem:[#allocation35_spill] sm:$0xff] %v2913_v16  ;;  %v2923_v20 = vld [vmem:[#allocation5 + $0x108] sm:$0xff]  ;;  %v2925_v24 = vld [vmem:[#allocation5 + $0x110] sm:$0xff]  ;;  %v2931_v29 = vld [vmem:[#allocation5 + $0x118] sm:$0xff] }
 0x175   :  { %1012 = vmatpush.msrb.mxu3 %v2887_v59  ;;  %953 = vmatpush.msrb.mxu0 %v2893_v2  ;;  %3732 = vst [vmem:[#allocation36_spill] sm:$0xff] %v2917_v17  ;;  %v160_v25 = vadd.f32 %v2765_v10, %v118_v8  ;;  %v2956_v8 = vld [vmem:[#allocation5 + $0xd8] sm:$0xff]  ;;  %v2978_v57 = vld [vmem:[#allocation5 + $0x80] sm:$0xff] }
 0x176   :  { %v2825_v33 = vadd.f32 %v651_v30, %v650_v31  ;;  %v639_v35 = vadd.f32 %v2152_v9, %v638_v32  ;;  %973 = vmatpush.msrb.mxu1 %v2895_v3  ;;  %994 = vmatpush.msrb.mxu2 %v2913_v16  ;;  %v2935_v30 = vld [vmem:[#allocation5 + $0xe0] sm:$0xff]  ;;  %v2937_v31 = vld [vmem:[#allocation5 + $0xe8] sm:$0xff]  ;;  %v2939_v32 = vld [vmem:[#allocation5 + $0xf0] sm:$0xff] }
 0x177   :  { %1013 = vmatpush.msrb.mxu3 %v2905_v11  ;;  %954 = vmatpush.msrb.mxu0 %v2909_v13  ;;  %v2999_v10 = vld [vmem:[#allocation5 + $0x40] sm:$0xff] }
 0x178   :  { %2155 = vtanh.f32 %v2825_v33  ;;  %v643_v38 = vsel %vm642_vm7, %v2152_v9, %v639_v35  ;;  %v119_v9 = vmul.f32 %v2759_v6, %v2889_v0  ;;  %974 = vmatpush.msrb.mxu1 %v2911_v14  ;;  %995 = vmatpush.msrb.mxu2 %v2925_v24  ;;  %3740 = vst [vmem:[#allocation44_spill] sm:$0xff] %v2999_v10 }
 0x179   :  { %v648_v41 = vsel %vm645_vm8, %v647_v39, %v643_v38  ;;  %1014 = vmatpush.msrb.mxu3 %v2917_v17  ;;  %955 = vmatpush.msrb.mxu0 %v2921_v19 }
 0x17a   :  { %v161_v26 = vadd.f32 %v2768_v12, %v119_v9  ;;  %975 = vmatpush.msrb.mxu1 %v2923_v20  ;;  %996 = vmatpush.msrb.mxu2 %v2939_v32  ;;  %v121_v9 = vmul.f32 %v2772_v15, %v2889_v0  ;;  %v2990_v15 = vld [vmem:[#allocation5 + $0x68] sm:$0xff]  ;;  %v2995_v12 = vld [vmem:[#allocation5 + $0x70] sm:$0xff] }
 0x17b   :  { %1015 = vmatpush.msrb.mxu3 %v2931_v29  ;;  %956 = vmatpush.msrb.mxu0 %v2935_v30  ;;  %3737 = vst [vmem:[#allocation41_spill] sm:$0xff] %v2990_v15 }
 0x17c   :  { %976 = vmatpush.msrb.mxu1 %v2937_v31  ;;  %3738 = vst [vmem:[#allocation42_spill] sm:$0xff] %v2995_v12 }
 0x17d   :  { %1016 = vmatpush.msrb.mxu3 %v2943_v36 }
 0x17e   :  { %v2156_v40 = vpop.eup %2155 }
 0x17f   :  { %v654_v42 = vmul.f32 %v2156_v40, %v648_v41  ;;  %v2948_v40 = vld [vmem:[#allocation5 + $0xc0] sm:$0xff]  ;;  %v2950_v41 = vld [vmem:[#allocation5 + $0xc8] sm:$0xff]  ;;  %1017 = vmatpush.msrb.mxu3 %v2956_v8 }
 0x180   :  { %957 = vmatpush.msrb.mxu0 %v2948_v40  ;;  %977 = vmatpush.msrb.mxu1 %v2950_v41 }
 0x181   :  { %744 = vmatmul.f32.vlgmr.msra.gmra.mxu0 %v654_v42  ;;  %764 = vmatmul.f32.vlgmr.msra.gmra.mxu1 %v654_v42  ;;  %2157 = vtanh.f32 %v654_v42 }
 0x182   :  { %784 = vmatmul.f32.vlgmr.msra.gmra.mxu2 %v654_v42  ;;  %804 = vmatmul.f32.vlgmr.msra.gmra.mxu3 %v654_v42  ;;  %v2952_v42 = vld [vmem:[#allocation5 + $0xd0] sm:$0xff] }
 0x183   :  { %997 = vmatpush.msrb.mxu2 %v2952_v42 }
 0x187   :  { %v2158_v4 = vpop.eup %2157 }
 0x188   :  { %v2000_v43 = vmul.f32 %v2158_v4, %v2793_v18  ;;  %v3011_v18 = vld [vmem:[#allocation5 + $0x20] sm:$0xff] }
 0x18a   :  { %2009 = vadd.xlane.f32.xlu0 %v2000_v43 }
 0x1fd   :  { %v2010_v35 = vpop.xlane.xlu0 %2009 }
 0x1fe   :  { %v2028_v37 = vadd.f32 %v2802_v28, %v2010_v35  ;;  %v745_v38 = vpop.f32.mrf.mxu0  ;;  %v765_v39 = vpop.f32.mrf.mxu1  ;;  %v2970_v35 = vld [vmem:[#allocation5 + $0xb0] sm:$0xff]  ;;  %v163_v28 = vadd.f32 %v2775_v21, %v121_v9  ;;  %v3007_v9 = vld [vmem:[#allocation5 + $0x58] sm:$0xff] }
 0x1ff   :  { %v808_v4 = vadd.f32 %v745_v38, %v160_v25  ;;  %v809_v43 = vadd.f32 %v765_v39, %v161_v26  ;;  %v2966_v25 = vld [vmem:[#allocation5 + $0xa0] sm:$0xff]  ;;  %v2968_v26 = vld [vmem:[#allocation5 + $0xa8] sm:$0xff]  ;;  %998 = vmatpush.msrb.mxu2 %v2970_v35 }
 0x200   :  { %2037 = vst.msk [vmem:[%s3623_s8 + $0x8] sm:$0xff] %vm2035_vm12, %v2028_v37  ;;  %958 = vmatpush.msrb.mxu0 %v2966_v25  ;;  %978 = vmatpush.msrb.mxu1 %v2968_v26  ;;  %v2974_v37 = vld [vmem:[#allocation5 + $0xb8] sm:$0xff] }
 0x201   :  { %v2094_v38 = vmul.f32 -1.442695, %v808_v4  ;;  %v2095_v39 = vmul.f32 -1.442695, %v809_v43  ;;  %1018 = vmatpush.msrb.mxu3 %v2974_v37  ;;  %v2986_v4 = vld [vmem:[#allocation5 + $0x98] sm:$0xff]  ;;  %v2988_v43 = vld [vmem:[#allocation5 + $0x60] sm:$0xff]  ;;  %999 = vmatpush.msrb.mxu2 %v2982_v22 }
 0x202   :  { %959 = vmatpush.msrb.mxu0 %v2978_v57  ;;  %979 = vmatpush.msrb.mxu1 %v2980_v23  ;;  %3735 = vst [vmem:[#allocation39_spill] sm:$0xff] %v2986_v4 }
 0x203   :  { %2159 = vpow2.f32 %v2094_v38  ;;  %3736 = vst [vmem:[#allocation40_spill] sm:$0xff] %v2988_v43  ;;  %1019 = vmatpush.msrb.mxu3 %v2986_v4  ;;  %v2997_v38 = vld [vmem:[#allocation5 + $0x78] sm:$0xff]  ;;  %1000 = vmatpush.msrb.mxu2 %v2995_v12  ;;  %v3013_v4 = vld [vmem:[#allocation5 + $0x28] sm:$0xff] }
 0x204   :  { %2161 = vpow2.f32 %v2095_v39  ;;  %3739 = vst [vmem:[#allocation43_spill] sm:$0xff] %v2997_v38  ;;  %960 = vmatpush.msrb.mxu0 %v2988_v43  ;;  %980 = vmatpush.msrb.mxu1 %v2990_v15  ;;  %v3005_v39 = vld [vmem:[#allocation5 + $0x50] sm:$0xff]  ;;  %v3019_v43 = vld [vmem:[#allocation5 + $0x38] sm:$0xff] }
 0x205   :  { %v805_v6 = vpop.f32.mrf.mxu3  ;;  %1020 = vmatpush.msrb.mxu3 %v2997_v38  ;;  %3742 = vst [vmem:[#allocation46_spill] sm:$0xff] %v3013_v4  ;;  %v3017_v15 = vld [vmem:[#allocation5 + $0x30] sm:$0xff]  ;;  %1001 = vmatpush.msrb.mxu2 %v3005_v39 }
 0x206   :  { %v811_v21 = vadd.f32 %v805_v6, %v163_v28  ;;  %961 = vmatpush.msrb.mxu0 %v2999_v10  ;;  %981 = vmatpush.msrb.mxu1 %v3003_v5  ;;  %v3023_v6 = vld [vmem:[#allocation5] sm:$0xff]  ;;  %v3025_v28 = vld [vmem:[#allocation5 + $0x8] sm:$0xff]  ;;  %v3029_v10 = vld [vmem:[#allocation5 + $0x10] sm:$0xff] }
 0x207   :  { %1021 = vmatpush.msrb.mxu3 %v3007_v9  ;;  %v3031_v5 = vld [vmem:[#allocation5 + $0x18] sm:$0xff]  ;;  %1002 = vmatpush.msrb.mxu2 %v3017_v15 }
 0x208   :  { %v2096_v22 = vmul.f32 -1.442695, %v811_v21  ;;  %962 = vmatpush.msrb.mxu0 %v3011_v18  ;;  %982 = vmatpush.msrb.mxu1 %v3013_v4  ;;  %v120_v4 = vmul.f32 %v2778_v27, %v2889_v0 }
 0x209   :  { %v2160_v38 = vpop.eup %2159  ;;  %1022 = vmatpush.msrb.mxu3 %v3019_v43  ;;  %1003 = vmatpush.msrb.mxu2 %v3029_v10 }
 0x20a   :  { %v2162_v12 = vpop.eup %2161  ;;  %v3033_v23 = vadd.f32 1.0, %v2160_v38  ;;  %2163 = vpow2.f32 %v2096_v22  ;;  %963 = vmatpush.msrb.mxu0 %v3023_v6  ;;  %983 = vmatpush.msrb.mxu1 %v3025_v28  ;;  %v162_v0 = vadd.f32 %v2781_v34, %v120_v4 }
 0x20b   :  { %v3037_v21 = vadd.f32 1.0, %v2162_v12  ;;  %1023 = vmatpush.msrb.mxu3 %v3031_v5  ;;  %1208 = vmatpush.msra.mxu2 %v2833_v46  ;;  %v785_v12 = vpop.f32.mrf.mxu2 }
 0x20c   :  { %2165 = vrcp.f32 %v3033_v23  ;;  %1168 = vmatpush.msra.mxu0 %v2829_v44  ;;  %1188 = vmatpush.msra.mxu1 %v2831_v45  ;;  %vm821_vm11 = vweird.f32 %v3033_v23 }
 0x20d   :  { %2167 = vrcp.f32 %v3037_v21  ;;  %1228 = vmatpush.msra.mxu3 %v2837_v47  ;;  %1209 = vmatpush.msra.mxu2 %v2845_v51  ;;  %v810_v47 = vadd.f32 %v785_v12, %v162_v0  ;;  %v827_v0 = vand.u32 2147483648, %v3033_v23  ;;  %v846_v34 = vand.u32 2147483648, %v3037_v21 }
 0x20e   :  { %1169 = vmatpush.msra.mxu0 %v2841_v48  ;;  %1189 = vmatpush.msra.mxu1 %v2843_v49  ;;  %vm840_vm13 = vweird.f32 %v3037_v21 }
 0x20f   :  { %1229 = vmatpush.msra.mxu3 %v2849_v52  ;;  %1210 = vmatpush.msra.mxu2 %v2857_v55 }
 0x210   :  { %v2164_v22 = vpop.eup %2163  ;;  %1170 = vmatpush.msra.mxu0 %v2853_v53  ;;  %1190 = vmatpush.msra.mxu1 %v2855_v54 }
 0x211   :  { %v3056_v38 = vadd.f32 1.0, %v2164_v22  ;;  %1230 = vmatpush.msra.mxu3 %v2861_v56  ;;  %1211 = vmatpush.msra.mxu2 %v2869_v61  ;;  %v825_v61 = vand.u32 2147483647, %v3033_v23 }
 0x212   :  { %v2166_v27 = vpop.eup %2165  ;;  %1171 = vmatpush.msra.mxu0 %v2865_v58  ;;  %1191 = vmatpush.msra.mxu1 %v2867_v60 }
 0x213   :  { %v2168_v49 = vpop.eup %2167  ;;  %v817_v48 = vmul.f32 %v2166_v27, %v3033_v23  ;;  %2169 = vrcp.f32 %v3056_v38  ;;  %1231 = vmatpush.msra.mxu3 %v2873_v62  ;;  %1212 = vmatpush.msra.mxu2 %v2881_v50  ;;  %vm822_vm9 = vweird.f32 %v2166_v27  ;;  %v847_v23 = vor.u32 1.1754944e-38, %v846_v34 }
 0x214   :  { %v836_v4 = vmul.f32 %v2168_v49, %v3037_v21  ;;  %1172 = vmatpush.msra.mxu0 %v2877_v63  ;;  %1192 = vmatpush.msra.mxu1 %v2879_v1  ;;  %2171 = vtanh.f32 %v810_v47  ;;  %vm841_vm10 = vweird.f32 %v2168_v49  ;;  %vm823_vm14 = vmor %vm821_vm11, %vm822_vm9  ;;  %vm826_vm0 = vcmp.eq.f32.partialorder %v825_v61, 8.507059e+37 }
 0x215   :  { %v818_v12 = vsub.f32 1.0, %v817_v48  ;;  %1232 = vmatpush.msra.mxu3 %v2887_v59  ;;  %1213 = vmatpush.msra.mxu2 %v2897_v7  ;;  %vm842_vm15 = vmor %vm840_vm13, %vm841_vm10  ;;  %v866_v61 = vand.u32 2147483648, %v3056_v38  ;;  %vm860_vm3 = vweird.f32 %v3056_v38 }
 0x216   :  { %v837_v22 = vsub.f32 1.0, %v836_v4  ;;  %1173 = vmatpush.msra.mxu0 %v2893_v2  ;;  %1193 = vmatpush.msra.mxu1 %v2895_v3  ;;  %v844_v4 = vand.u32 2147483647, %v3037_v21 }
 0x217   :  { %v819_v60 = vmul.f32 %v2166_v27, %v818_v12  ;;  %1233 = vmatpush.msra.mxu3 %v2905_v11  ;;  %v828_v12 = vor.u32 1.1754944e-38, %v827_v0  ;;  %1214 = vmatpush.msra.mxu2 %v2913_v16 }
 0x218   :  { %v838_v48 = vmul.f32 %v2168_v49, %v837_v22  ;;  %1174 = vmatpush.msra.mxu0 %v2909_v13  ;;  %1194 = vmatpush.msra.mxu1 %v2911_v14  ;;  %vm845_vm1 = vcmp.eq.f32.partialorder %v844_v4, 8.507059e+37  ;;  %v3746_v4 = vld [vmem:[#allocation40_spill] sm:$0xff] }
 0x219   :  { %v3081_v47 = vpop.eup %2169  ;;  %v820_v59 = vadd.f32 %v2166_v27, %v819_v60  ;;  %1234 = vmatpush.msra.mxu3 %v2917_v17  ;;  %1215 = vmatpush.msra.mxu2 %v2925_v24 }
 0x21a   :  { %v839_v22 = vadd.f32 %v2168_v49, %v838_v48  ;;  %v856_v7 = vmul.f32 %v3081_v47, %v3056_v38  ;;  %1175 = vmatpush.msra.mxu0 %v2921_v19  ;;  %1195 = vmatpush.msra.mxu1 %v2923_v20  ;;  %v2172_v21 = vpop.eup %2171  ;;  %vm861_vm2 = vweird.f32 %v3081_v47 }
 0x21b   :  { %v824_v60 = vsel %vm823_vm14, %v2166_v27, %v820_v59  ;;  %1235 = vmatpush.msra.mxu3 %v2931_v29  ;;  %1216 = vmatpush.msra.mxu2 %v2939_v32  ;;  %v864_v59 = vand.u32 2147483647, %v3056_v38  ;;  %vm862_vm4 = vmor %vm860_vm3, %vm861_vm2  ;;  %v3750_v38 = vld [vmem:[#allocation44_spill] sm:$0xff] }
 0x21c   :  { %v829_v14 = vsel %vm826_vm0, %v828_v12, %v824_v60  ;;  %v843_v0 = vsel %vm842_vm15, %v2168_v49, %v839_v22  ;;  %v857_v48 = vsub.f32 1.0, %v856_v7  ;;  %1176 = vmatpush.msra.mxu0 %v2935_v30  ;;  %1196 = vmatpush.msra.mxu1 %v2937_v31  ;;  %v3743_v7 = vld [vmem:[#allocation37_spill] sm:$0xff]  ;;  %v867_v22 = vor.u32 1.1754944e-38, %v866_v61  ;;  %v3749_v60 = vld [vmem:[#allocation43_spill] sm:$0xff] }
 0x21d   :  { %v848_v16 = vsel %vm845_vm1, %v847_v23, %v843_v0  ;;  %v871_v17 = vmul.f32 %v2172_v21, %v829_v14  ;;  %1236 = vmatpush.msra.mxu3 %v2943_v36  ;;  %1217 = vmatpush.msra.mxu2 %v2952_v42  ;;  %v3744_v14 = vld [vmem:[#allocation38_spill] sm:$0xff]  ;;  %v3747_v12 = vld [vmem:[#allocation41_spill] sm:$0xff]  ;;  %vm865_vm5 = vcmp.eq.f32.partialorder %v864_v59, 8.507059e+37  ;;  %v3754_v61 = vld [vmem:[#allocation27_spill] sm:$0xff] }
 0x21e   :  { %v870_v27 = vmul.f32 %v848_v16, %v2825_v33  ;;  %v858_v34 = vmul.f32 %v3081_v47, %v857_v48  ;;  %1177 = vmatpush.msra.mxu0 %v2948_v40  ;;  %1197 = vmatpush.msra.mxu1 %v2950_v41  ;;  %v3745_v16 = vld [vmem:[#allocation39_spill] sm:$0xff]  ;;  %v3748_v23 = vld [vmem:[#allocation42_spill] sm:$0xff]  ;;  %v3751_v21 = vld [vmem:[#allocation45_spill] sm:$0xff] }
 0x21f   :  { %1237 = vmatpush.msra.mxu3 %v2956_v8  ;;  %1218 = vmatpush.msra.mxu2 %v2970_v35  ;;  %v3755_v59 = vld [vmem:[#allocation28_spill] sm:$0xff] }
 0x220   :  { %v3105_v49 = vadd.f32 %v871_v17, %v870_v27  ;;  %v859_v33 = vadd.f32 %v3081_v47, %v858_v34  ;;  %1178 = vmatpush.msra.mxu0 %v2966_v25  ;;  %1198 = vmatpush.msra.mxu1 %v2968_v26  ;;  %v3752_v27 = vld [vmem:[#allocation46_spill] sm:$0xff] }
 0x221   :  { %1238 = vmatpush.msra.mxu3 %v2974_v37  ;;  %1219 = vmatpush.msra.mxu2 %v3744_v14  ;;  %v3753_v34 = vld [vmem:[#allocation26_spill] sm:$0xff] }
 0x222   :  { %2173 = vtanh.f32 %v3105_v49  ;;  %1179 = vmatpush.msra.mxu0 %v2978_v57  ;;  %1199 = vmatpush.msra.mxu1 %v3743_v7  ;;  %v863_v17 = vsel %vm862_vm4, %v3081_v47, %v859_v33 }
 0x223   :  { %1239 = vmatpush.msra.mxu3 %v3745_v16  ;;  %1220 = vmatpush.msra.mxu2 %v3748_v23  ;;  %v868_v48 = vsel %vm865_vm5, %v867_v22, %v863_v17  ;;  %v3756_v17 = vld [vmem:[#allocation22_spill] sm:$0xff] }
 0x224   :  { %1180 = vmatpush.msra.mxu0 %v3746_v4  ;;  %1200 = vmatpush.msra.mxu1 %v3747_v12 }
 0x225   :  { %1240 = vmatpush.msra.mxu3 %v3749_v60  ;;  %1221 = vmatpush.msra.mxu2 %v3005_v39 }
 0x226   :  { %1181 = vmatpush.msra.mxu0 %v3750_v38  ;;  %1201 = vmatpush.msra.mxu1 %v3751_v21 }
 0x227   :  { %1241 = vmatpush.msra.mxu3 %v3007_v9  ;;  %1222 = vmatpush.msra.mxu2 %v3017_v15 }
 0x228   :  { %v2174_v0 = vpop.eup %2173  ;;  %1182 = vmatpush.msra.mxu0 %v3011_v18  ;;  %1202 = vmatpush.msra.mxu1 %v3752_v27 }
 0x229   :  { %v874_v47 = vmul.f32 %v2174_v0, %v868_v48  ;;  %1242 = vmatpush.msra.mxu3 %v3019_v43  ;;  %1223 = vmatpush.msra.mxu2 %v3029_v10 }
 0x22a   :  { %1183 = vmatpush.msra.mxu0 %v3023_v6  ;;  %1203 = vmatpush.msra.mxu1 %v3025_v28 }
 0x22b   :  { %964 = vmatmul.f32.vlgmr.msrb.gmra.mxu0 %v874_v47  ;;  %984 = vmatmul.f32.vlgmr.msrb.gmra.mxu1 %v874_v47  ;;  %2175 = vtanh.f32 %v874_v47 }
 0x22c   :  { %1004 = vmatmul.f32.vlgmr.msrb.gmra.mxu2 %v874_v47  ;;  %1024 = vmatmul.f32.vlgmr.msrb.gmra.mxu3 %v874_v47 }
 0x22d   :  { %1243 = vmatpush.msra.mxu3 %v3031_v5  ;;  %1388 = vmatpush.msrb.mxu0 %v2829_v44  ;;  %v3757_v44 = vld [vmem:[#allocation29_spill] sm:$0xff] }
 0x22e   :  { %1408 = vmatpush.msrb.mxu1 %v2831_v45  ;;  %1428 = vmatpush.msrb.mxu2 %v2833_v46  ;;  %v3758_v45 = vld [vmem:[#allocation30_spill] sm:$0xff]  ;;  %v3759_v46 = vld [vmem:[#allocation32_spill] sm:$0xff] }
 0x22f   :  { %1448 = vmatpush.msrb.mxu3 %v3753_v34  ;;  %1389 = vmatpush.msrb.mxu0 %v3754_v61 }
 0x230   :  { %1409 = vmatpush.msrb.mxu1 %v3755_v59  ;;  %1429 = vmatpush.msrb.mxu2 %v2845_v51  ;;  %v3760_v51 = vld [vmem:[#allocation33_spill] sm:$0xff] }
 0x231   :  { %v2176_v33 = vpop.eup %2175  ;;  %1449 = vmatpush.msrb.mxu3 %v2849_v52  ;;  %1390 = vmatpush.msrb.mxu0 %v2853_v53  ;;  %v3761_v52 = vld [vmem:[#allocation34_spill] sm:$0xff]  ;;  %v3762_v53 = vld [vmem:[#allocation35_spill] sm:$0xff] }
 0x232   :  { %v2001_v22 = vmul.f32 %v2176_v33, %v3756_v17  ;;  %1410 = vmatpush.msrb.mxu1 %v2855_v54  ;;  %1430 = vmatpush.msrb.mxu2 %v2857_v55  ;;  %v3763_v54 = vld [vmem:[#allocation36_spill] sm:$0xff]  ;;  %v79_v55 = vpop.permute.xlu1 %78 }
 0x233   :  { %1450 = vmatpush.msrb.mxu3 %v2861_v56  ;;  %1391 = vmatpush.msrb.mxu0 %v2865_v58  ;;  %v3765_v58 = vld [vmem:[#allocation14_spill] sm:$0xff] }
 0x234   :  { %2011 = vadd.xlane.f32.xlu1 %v2001_v22  ;;  %1411 = vmatpush.msrb.mxu1 %v3757_v44 }
 0x235   :  { %1431 = vmatpush.msrb.mxu2 %v3758_v45  ;;  %1451 = vmatpush.msrb.mxu3 %v2873_v62  ;;  %v122_v62 = vmul.f32 %v3765_v58, %v79_v55 }
 0x236   :  { %1392 = vmatpush.msrb.mxu0 %v2877_v63  ;;  %1412 = vmatpush.msrb.mxu1 %v2879_v1 }
 0x237   :  { %1432 = vmatpush.msrb.mxu2 %v2881_v50  ;;  %1452 = vmatpush.msrb.mxu3 %v3759_v46  ;;  %v3767_v50 = vld [vmem:[#allocation16_spill] sm:$0xff] }
 0x238   :  { %1393 = vmatpush.msrb.mxu0 %v2893_v2  ;;  %1413 = vmatpush.msrb.mxu1 %v2895_v3  ;;  %v3769_v3 = vld [vmem:[#allocation25_spill] sm:$0xff] }
 0x239   :  { %1433 = vmatpush.msrb.mxu2 %v3760_v51  ;;  %1453 = vmatpush.msrb.mxu3 %v2905_v11 }
 0x23a   :  { %1394 = vmatpush.msrb.mxu0 %v2909_v13  ;;  %1414 = vmatpush.msrb.mxu1 %v3761_v52  ;;  %v3205_v56 = vpop.permute.xlu1 %98 }
 0x23b   :  { %1434 = vmatpush.msrb.mxu2 %v3762_v53  ;;  %1454 = vmatpush.msrb.mxu3 %v3763_v54  ;;  %3764 = vst [vmem:[#allocation37_spill] sm:$0xff] %v3205_v56  ;;  %v3403_v56 = vld [vmem:[#allocation5 + $0x90] sm:$0xff] }
 0x23c   :  { %1395 = vmatpush.msrb.mxu0 %v2921_v19  ;;  %1415 = vmatpush.msrb.mxu1 %v2923_v20  ;;  %3779 = vst [vmem:[#allocation41_spill] sm:$0xff] %v3403_v56 }
 0x23d   :  { %1435 = vmatpush.msrb.mxu2 %v2925_v24  ;;  %1455 = vmatpush.msrb.mxu3 %v2931_v29 }
 0x23e   :  { %1396 = vmatpush.msrb.mxu0 %v2935_v30  ;;  %1416 = vmatpush.msrb.mxu1 %v2937_v31  ;;  %v3771_v31 = vld [vmem:[#allocation19_spill] sm:$0xff] }
 0x23f   :  { %1436 = vmatpush.msrb.mxu2 %v2939_v32  ;;  %1456 = vmatpush.msrb.mxu3 %v2943_v36 }
 0x240   :  { %1397 = vmatpush.msrb.mxu0 %v2948_v40  ;;  %1417 = vmatpush.msrb.mxu1 %v2950_v41 }
 0x241   :  { %1437 = vmatpush.msrb.mxu2 %v2952_v42  ;;  %1457 = vmatpush.msrb.mxu3 %v2956_v8 }
 0x242   :  { %1398 = vmatpush.msrb.mxu0 %v2966_v25  ;;  %1418 = vmatpush.msrb.mxu1 %v2968_v26 }
 0x243   :  { %1438 = vmatpush.msrb.mxu2 %v2970_v35  ;;  %1458 = vmatpush.msrb.mxu3 %v2974_v37  ;;  %v3772_v35 = vld [vmem:[#allocation20_spill] sm:$0xff] }
 0x244   :  { %1399 = vmatpush.msrb.mxu0 %v2978_v57  ;;  %1419 = vmatpush.msrb.mxu1 %v3743_v7  ;;  %v3768_v57 = vld [vmem:[#allocation17_spill] sm:$0xff]  ;;  %v124_v37 = vmul.f32 %v3772_v35, %v79_v55 }
 0x245   :  { %1439 = vmatpush.msrb.mxu2 %v3744_v14  ;;  %1459 = vmatpush.msrb.mxu3 %v3745_v16 }
 0x246   :  { %1400 = vmatpush.msrb.mxu0 %v3746_v4  ;;  %1420 = vmatpush.msrb.mxu1 %v3747_v12 }
 0x247   :  { %1440 = vmatpush.msrb.mxu2 %v3748_v23  ;;  %1460 = vmatpush.msrb.mxu3 %v3749_v60 }
 0x248   :  { %1401 = vmatpush.msrb.mxu0 %v3750_v38  ;;  %1421 = vmatpush.msrb.mxu1 %v3751_v21 }
 0x249   :  { %1441 = vmatpush.msrb.mxu2 %v3005_v39  ;;  %1461 = vmatpush.msrb.mxu3 %v3007_v9  ;;  %v3773_v9 = vld [vmem:[#allocation21_spill] sm:$0xff] }
 0x24a   :  { %1402 = vmatpush.msrb.mxu0 %v3011_v18  ;;  %1422 = vmatpush.msrb.mxu1 %v3752_v27  ;;  %v3766_v18 = vld [vmem:[#allocation15_spill] sm:$0xff] }
 0x24b   :  { %1442 = vmatpush.msrb.mxu2 %v3017_v15  ;;  %1462 = vmatpush.msrb.mxu3 %v3019_v43  ;;  %v123_v63 = vmul.f32 %v3766_v18, %v79_v55  ;;  %v164_v15 = vadd.f32 %v3767_v50, %v122_v62 }
 0x24c   :  { %1403 = vmatpush.msrb.mxu0 %v3023_v6  ;;  %1423 = vmatpush.msrb.mxu1 %v3025_v28  ;;  %v166_v6 = vadd.f32 %v3773_v9, %v124_v37 }
 0x24d   :  { %1443 = vmatpush.msrb.mxu2 %v3029_v10  ;;  %1463 = vmatpush.msrb.mxu3 %v3031_v5  ;;  %v165_v2 = vadd.f32 %v3768_v57, %v123_v63  ;;  %v3770_v5 = vld [vmem:[#allocation18_spill] sm:$0xff] }
 0x24e   :  { %v125_v24 = vmul.f32 %v3770_v5, %v79_v55 }
 0x250   :  { %v167_v32 = vadd.f32 %v3771_v31, %v125_v24 }
 0x2a7   :  { %v2012_v1 = vpop.xlane.xlu1 %2011 }
 0x2a8   :  { %v2029_v11 = vadd.f32 %v3769_v3, %v2012_v1  ;;  %v965_v13 = vpop.f32.mrf.mxu0  ;;  %v985_v19 = vpop.f32.mrf.mxu1 }
 0x2a9   :  { %v1028_v20 = vadd.f32 %v965_v13, %v164_v15  ;;  %v1029_v10 = vadd.f32 %v985_v19, %v165_v2 }
 0x2aa   :  { %2038 = vst.msk [vmem:[%s3623_s8 + $0x10] sm:$0xff] %vm2035_vm12, %v2029_v11 }
 0x2ab   :  { %v2097_v29 = vmul.f32 -1.442695, %v1028_v20  ;;  %v2098_v30 = vmul.f32 -1.442695, %v1029_v10  ;;  %v3227_v10 = vld [vmem:[%s3619_s4] ss:$0 sm:$0xff] }
 0x2ac   :  { %3774 = vst [vmem:[#allocation38_spill] sm:$0xff] %v3227_v10 }
 0x2ad   :  { %2177 = vpow2.f32 %v2097_v29  ;;  %v3775_v29 = vld [vmem:[#allocation23_spill] sm:$0xff] }
 0x2ae   :  { %2179 = vpow2.f32 %v2098_v30  ;;  %v126_v30 = vmul.f32 %v3765_v58, %v3775_v29 }
 0x2af   :  { %v1025_v36 = vpop.f32.mrf.mxu3  ;;  %v1005_v43 = vpop.f32.mrf.mxu2 }
 0x2b0   :  { %v1031_v40 = vadd.f32 %v1025_v36, %v167_v32  ;;  %v1030_v14 = vadd.f32 %v1005_v43, %v166_v6  ;;  %v127_v32 = vmul.f32 %v3766_v18, %v3775_v29  ;;  %v168_v36 = vadd.f32 %v3767_v50, %v126_v30 }
 0x2b2   :  { %v2099_v41 = vmul.f32 -1.442695, %v1031_v40  ;;  %v169_v40 = vadd.f32 %v3768_v57, %v127_v32 }
 0x2b3   :  { %v2178_v42 = vpop.eup %2177 }
 0x2b4   :  { %v2180_v8 = vpop.eup %2179  ;;  %v1035_v25 = vadd.f32 1.0, %v2178_v42  ;;  %2181 = vpow2.f32 %v2099_v41  ;;  %v3236_v42 = vld [vmem:[#allocation4] ss:$0 sm:$0xff] }
 0x2b5   :  { %v1054_v26 = vadd.f32 1.0, %v2180_v8  ;;  %3776 = vst [vmem:[#allocation39_spill] sm:$0xff] %v3236_v42 }
 0x2b6   :  { %2183 = vrcp.f32 %v1035_v25  ;;  %v1047_v38 = vand.u32 2147483648, %v1035_v25  ;;  %v1045_v48 = vand.u32 2147483647, %v1035_v25  ;;  %vm1041_vm8 = vweird.f32 %v1035_v25 }
 0x2b7   :  { %2185 = vrcp.f32 %v1054_v26  ;;  %v1066_v21 = vand.u32 2147483648, %v1054_v26  ;;  %v1064_v27 = vand.u32 2147483647, %v1054_v26  ;;  %vm1060_vm9 = vweird.f32 %v1054_v26 }
 0x2b8   :  { %v1048_v61 = vor.u32 1.1754944e-38, %v1047_v38  ;;  %vm1046_vm13 = vcmp.eq.f32.partialorder %v1045_v48, 8.507059e+37 }
 0x2b9   :  { %v1067_v22 = vor.u32 1.1754944e-38, %v1066_v21  ;;  %vm1065_vm14 = vcmp.eq.f32.partialorder %v1064_v27, 8.507059e+37  ;;  %v128_v21 = vmul.f32 %v3772_v35, %v3775_v29 }
 0x2ba   :  { %v2182_v39 = vpop.eup %2181 }
 0x2bb   :  { %v1074_v28 = vadd.f32 1.0, %v2182_v39  ;;  %v129_v39 = vmul.f32 %v3770_v5, %v3775_v29 }
 0x2bc   :  { %v2184_v7 = vpop.eup %2183 }
 0x2bd   :  { %v2186_v16 = vpop.eup %2185  ;;  %v1037_v4 = vmul.f32 %v2184_v7, %v1035_v25  ;;  %2187 = vrcp.f32 %v1074_v28  ;;  %vm1042_vm6 = vweird.f32 %v2184_v7  ;;  %v1086_v15 = vand.u32 2147483648, %v1074_v28 }
 0x2be   :  { %v1056_v12 = vmul.f32 %v2186_v16, %v1054_v26  ;;  %2189 = vtanh.f32 %v1030_v14  ;;  %vm1061_vm7 = vweird.f32 %v2186_v16  ;;  %vm1043_vm10 = vmor %vm1041_vm8, %vm1042_vm6  ;;  %vm1080_vm0 = vweird.f32 %v1074_v28 }
 0x2bf   :  { %v1038_v23 = vsub.f32 1.0, %v1037_v4  ;;  %vm1062_vm11 = vmor %vm1060_vm9, %vm1061_vm7  ;;  %v1084_v2 = vand.u32 2147483647, %v1074_v28  ;;  %v1087_v11 = vor.u32 1.1754944e-38, %v1086_v15 }
 0x2c0   :  { %v1057_v60 = vsub.f32 1.0, %v1056_v12 }
 0x2c1   :  { %v1039_v0 = vmul.f32 %v2184_v7, %v1038_v23  ;;  %vm1085_vm2 = vcmp.eq.f32.partialorder %v1084_v2, 8.507059e+37 }
 0x2c2   :  { %v1058_v47 = vmul.f32 %v2186_v16, %v1057_v60 }
 0x2c3   :  { %v2188_v34 = vpop.eup %2187  ;;  %v1040_v33 = vadd.f32 %v2184_v7, %v1039_v0 }
 0x2c4   :  { %v1059_v59 = vadd.f32 %v2186_v16, %v1058_v47  ;;  %v1076_v17 = vmul.f32 %v2188_v34, %v1074_v28  ;;  %v2190_v45 = vpop.eup %2189  ;;  %vm1081_vm15 = vweird.f32 %v2188_v34  ;;  %v170_v47 = vadd.f32 %v3773_v9, %v128_v21  ;;  %v3280_v21 = vld [vmem:[#allocation5 + $0x1a8] sm:$0xff] }
 0x2c5   :  { %v1044_v44 = vsel %vm1043_vm10, %v2184_v7, %v1040_v33  ;;  %vm1082_vm1 = vmor %vm1080_vm0, %vm1081_vm15  ;;  %v171_v7 = vadd.f32 %v3771_v31, %v129_v39 }
 0x2c6   :  { %v1049_v46 = vsel %vm1046_vm13, %v1048_v61, %v1044_v44  ;;  %v1063_v51 = vsel %vm1062_vm11, %v2186_v16, %v1059_v59  ;;  %v1077_v52 = vsub.f32 1.0, %v1076_v17 }
 0x2c7   :  { %v1068_v53 = vsel %vm1065_vm14, %v1067_v22, %v1063_v51  ;;  %v1091_v54 = vmul.f32 %v2190_v45, %v1049_v46 }
 0x2c8   :  { %v1090_v55 = vmul.f32 %v1068_v53, %v3105_v49  ;;  %v1078_v62 = vmul.f32 %v2188_v34, %v1077_v52 }
 0x2ca   :  { %v3221_v63 = vadd.f32 %v1091_v54, %v1090_v55  ;;  %v1079_v1 = vadd.f32 %v2188_v34, %v1078_v62 }
 0x2cc   :  { %2191 = vtanh.f32 %v3221_v63  ;;  %v1083_v3 = vsel %vm1082_vm1, %v2188_v34, %v1079_v1 }
 0x2cd   :  { %v1088_v19 = vsel %vm1085_vm2, %v1087_v11, %v1083_v3 }
 0x2d2   :  { %v2192_v13 = vpop.eup %2191 }
 0x2d3   :  { %v1094_v20 = vmul.f32 %v2192_v13, %v1088_v19 }
 0x2d5   :  { %1184 = vmatmul.f32.vlgmr.msra.gmra.mxu0 %v1094_v20  ;;  %1204 = vmatmul.f32.vlgmr.msra.gmra.mxu1 %v1094_v20  ;;  %2193 = vtanh.f32 %v1094_v20 }
 0x2d6   :  { %1224 = vmatmul.f32.vlgmr.msra.gmra.mxu2 %v1094_v20  ;;  %1244 = vmatmul.f32.vlgmr.msra.gmra.mxu3 %v1094_v20 }
 0x2db   :  { %v2194_v49 = vpop.eup %2193 }
 0x2dc   :  { %v2002_v24 = vmul.f32 %v3227_v10, %v2194_v49 }
 0x2de   :  { %2013 = vadd.xlane.f32.xlu2 %v2002_v24 }
 0x351   :  { %v2014_v41 = vpop.xlane.xlu2 %2013 }
 0x352   :  { %v2030_v8 = vadd.f32 %v3236_v42, %v2014_v41  ;;  %v1185_v25 = vpop.f32.mrf.mxu0  ;;  %v1205_v26 = vpop.f32.mrf.mxu1 }
 0x353   :  { %v1248_v37 = vadd.f32 %v1185_v25, %v168_v36  ;;  %v1249_v43 = vadd.f32 %v1205_v26, %v169_v40 }
 0x354   :  { %2039 = vst.msk [vmem:[%s3623_s8 + $0x18] sm:$0xff] %vm2035_vm12, %v2030_v8 }
 0x355   :  { %v2100_v6 = vmul.f32 -1.442695, %v1248_v37  ;;  %v2101_v28 = vmul.f32 -1.442695, %v1249_v43 }
 0x357   :  { %2195 = vpow2.f32 %v2100_v6 }
 0x358   :  { %2197 = vpow2.f32 %v2101_v28  ;;  %v3254_v28 = vld [vmem:[#allocation5 + $0x1e0] sm:$0xff] }
 0x359   :  { %v1245_v14 = vpop.f32.mrf.mxu3  ;;  %v1225_v0 = vpop.f32.mrf.mxu2  ;;  %1608 = vmatpush.msra.mxu0 %v3254_v28 }
 0x35a   :  { %v1251_v16 = vadd.f32 %v1245_v14, %v171_v7  ;;  %v1250_v33 = vadd.f32 %v1225_v0, %v170_v47  ;;  %v3256_v7 = vld [vmem:[#allocation5 + $0x1e8] sm:$0xff]  ;;  %v3258_v14 = vld [vmem:[#allocation5 + $0x1f0] sm:$0xff]  ;;  %v3290_v47 = vld [vmem:[#allocation5 + $0x180] sm:$0xff] }
 0x35b   :  { %1628 = vmatpush.msra.mxu1 %v3256_v7  ;;  %1648 = vmatpush.msra.mxu2 %v3258_v14  ;;  %v3282_v0 = vld [vmem:[#allocation5 + $0x1b0] sm:$0xff] }
 0x35c   :  { %v2102_v4 = vmul.f32 -1.442695, %v1251_v16  ;;  %v3262_v16 = vld [vmem:[#allocation5 + $0x1f8] sm:$0xff] }
 0x35d   :  { %v2196_v12 = vpop.eup %2195  ;;  %1668 = vmatpush.msra.mxu3 %v3262_v16 }
 0x35e   :  { %v2198_v23 = vpop.eup %2197  ;;  %v1255_v60 = vadd.f32 1.0, %v2196_v12  ;;  %2199 = vpow2.f32 %v2102_v4  ;;  %v3266_v4 = vld [vmem:[#allocation5 + $0x1c0] sm:$0xff]  ;;  %v3268_v12 = vld [vmem:[#allocation5 + $0x1c8] sm:$0xff] }
 0x35f   :  { %v1274_v38 = vadd.f32 1.0, %v2198_v23  ;;  %v3270_v23 = vld [vmem:[#allocation5 + $0x1d0] sm:$0xff]  ;;  %1609 = vmatpush.msra.mxu0 %v3266_v4  ;;  %1629 = vmatpush.msra.mxu1 %v3268_v12 }
 0x360   :  { %2201 = vrcp.f32 %v1255_v60  ;;  %v1267_v45 = vand.u32 2147483648, %v1255_v60  ;;  %v1265_v52 = vand.u32 2147483647, %v1255_v60  ;;  %vm1261_vm5 = vweird.f32 %v1255_v60  ;;  %1649 = vmatpush.msra.mxu2 %v3270_v23 }
 0x361   :  { %2203 = vrcp.f32 %v1274_v38  ;;  %v1286_v46 = vand.u32 2147483648, %v1274_v38  ;;  %v1284_v54 = vand.u32 2147483647, %v1274_v38  ;;  %vm1280_vm6 = vweird.f32 %v1274_v38  ;;  %1630 = vmatpush.msra.mxu1 %v3280_v21 }
 0x362   :  { %v1268_v1 = vor.u32 1.1754944e-38, %v1267_v45  ;;  %vm1266_vm9 = vcmp.eq.f32.partialorder %v1265_v52, 8.507059e+37  ;;  %1650 = vmatpush.msra.mxu2 %v3282_v0  ;;  %v3316_v45 = vld [vmem:[#allocation5 + $0x148] sm:$0xff]  ;;  %v3326_v52 = vld [vmem:[#allocation5 + $0x120] sm:$0xff] }
 0x363   :  { %v1287_v3 = vor.u32 1.1754944e-38, %v1286_v46  ;;  %vm1285_vm10 = vcmp.eq.f32.partialorder %v1284_v54, 8.507059e+37  ;;  %v3318_v46 = vld [vmem:[#allocation5 + $0x150] sm:$0xff] }
 0x364   :  { %v2200_v48 = vpop.eup %2199  ;;  %v3330_v54 = vld [vmem:[#allocation5 + $0x130] sm:$0xff] }
 0x365   :  { %v1294_v27 = vadd.f32 1.0, %v2200_v48  ;;  %v3286_v48 = vld [vmem:[#allocation5 + $0x1b8] sm:$0xff] }
 0x366   :  { %v2202_v34 = vpop.eup %2201 }
 0x367   :  { %v2204_v61 = vpop.eup %2203  ;;  %v1257_v59 = vmul.f32 %v2202_v34, %v1255_v60  ;;  %2205 = vrcp.f32 %v1294_v27  ;;  %vm1262_vm3 = vweird.f32 %v2202_v34  ;;  %v1306_v41 = vand.u32 2147483648, %v1294_v27  ;;  %v3274_v60 = vld [vmem:[#allocation5 + $0x1d8] sm:$0xff] }
 0x368   :  { %v1276_v17 = vmul.f32 %v2204_v61, %v1274_v38  ;;  %2207 = vtanh.f32 %v1250_v33  ;;  %vm1281_vm4 = vweird.f32 %v2204_v61  ;;  %vm1263_vm7 = vmor %vm1261_vm5, %vm1262_vm3  ;;  %vm1300_vm13 = vweird.f32 %v1294_v27  ;;  %1669 = vmatpush.msra.mxu3 %v3274_v60  ;;  %v3278_v38 = vld [vmem:[#allocation5 + $0x1a0] sm:$0xff]  ;;  %v3298_v33 = vld [vmem:[#allocation5 + $0x198] sm:$0xff] }
 0x369   :  { %v1258_v22 = vsub.f32 1.0, %v1257_v59  ;;  %vm1282_vm8 = vmor %vm1280_vm6, %vm1281_vm4  ;;  %v1304_v8 = vand.u32 2147483647, %v1294_v27  ;;  %v1307_v26 = vor.u32 1.1754944e-38, %v1306_v41  ;;  %1610 = vmatpush.msra.mxu0 %v3278_v38  ;;  %v3304_v59 = vld [vmem:[#allocation5 + $0x168] sm:$0xff] }
 0x36a   :  { %v1277_v44 = vsub.f32 1.0, %v1276_v17  ;;  %1670 = vmatpush.msra.mxu3 %v3286_v48  ;;  %v3306_v17 = vld [vmem:[#allocation5 + $0x170] sm:$0xff] }
 0x36b   :  { %v1259_v51 = vmul.f32 %v2202_v34, %v1258_v22  ;;  %vm1305_vm15 = vcmp.eq.f32.partialorder %v1304_v8, 8.507059e+37  ;;  %1611 = vmatpush.msra.mxu0 %v3290_v47  ;;  %v3310_v22 = vld [vmem:[#allocation5 + $0x178] sm:$0xff] }
 0x36c   :  { %v1278_v53 = vmul.f32 %v2204_v61, %v1277_v44  ;;  %1671 = vmatpush.msra.mxu3 %v3298_v33  ;;  %v3314_v44 = vld [vmem:[#allocation5 + $0x140] sm:$0xff] }
 0x36d   :  { %v2206_v55 = vpop.eup %2205  ;;  %v1260_v62 = vadd.f32 %v2202_v34, %v1259_v51  ;;  %v3322_v51 = vld [vmem:[#allocation5 + $0x158] sm:$0xff] }
 0x36e   :  { %v1279_v15 = vadd.f32 %v2204_v61, %v1278_v53  ;;  %v1296_v2 = vmul.f32 %v2206_v55, %v1294_v27  ;;  %v2208_v13 = vpop.eup %2207  ;;  %vm1301_vm11 = vweird.f32 %v2206_v55  ;;  %v3292_v27 = vld [vmem:[#allocation5 + $0x188] sm:$0xff]  ;;  %1672 = vmatpush.msra.mxu3 %v3310_v22 }
 0x36f   :  { %v1264_v11 = vsel %vm1263_vm7, %v2202_v34, %v1260_v62  ;;  %vm1302_vm14 = vmor %vm1300_vm13, %vm1301_vm11  ;;  %v3294_v34 = vld [vmem:[#allocation5 + $0x190] sm:$0xff]  ;;  %1631 = vmatpush.msra.mxu1 %v3292_v27  ;;  %v3328_v53 = vld [vmem:[#allocation5 + $0x128] sm:$0xff] }
 0x370   :  { %v1269_v19 = vsel %vm1266_vm9, %v1268_v1, %v1264_v11  ;;  %v1283_v20 = vsel %vm1282_vm8, %v2204_v61, %v1279_v15  ;;  %v1297_v49 = vsub.f32 1.0, %v1296_v2  ;;  %1651 = vmatpush.msra.mxu2 %v3294_v34  ;;  %v3302_v61 = vld [vmem:[#allocation5 + $0x160] sm:$0xff]  ;;  %1673 = vmatpush.msra.mxu3 %v3322_v51  ;;  %v3338_v15 = vld [vmem:[#allocation5 + $0x138] sm:$0xff]  ;;  %v3346_v11 = vld [vmem:[#allocation5 + $0x110] sm:$0xff] }
 0x371   :  { %v1288_v24 = vsel %vm1285_vm10, %v1287_v3, %v1283_v20  ;;  %v1311_v29 = vmul.f32 %v2208_v13, %v1269_v19  ;;  %1612 = vmatpush.msra.mxu0 %v3302_v61  ;;  %1632 = vmatpush.msra.mxu1 %v3304_v59  ;;  %v3342_v2 = vld [vmem:[#allocation5 + $0x100] sm:$0xff]  ;;  %v3344_v3 = vld [vmem:[#allocation5 + $0x108] sm:$0xff]  ;;  %v3350_v13 = vld [vmem:[#allocation5 + $0x118] sm:$0xff] }
 0x372   :  { %v1310_v30 = vmul.f32 %v1288_v24, %v3221_v63  ;;  %v1298_v32 = vmul.f32 %v2206_v55, %v1297_v49  ;;  %1652 = vmatpush.msra.mxu2 %v3306_v17  ;;  %1674 = vmatpush.msra.mxu3 %v3338_v15  ;;  %v3354_v19 = vld [vmem:[#allocation5 + $0xe0] sm:$0xff]  ;;  %v3356_v20 = vld [vmem:[#allocation5 + $0xe8] sm:$0xff]  ;;  %v3358_v49 = vld [vmem:[#allocation5 + $0xf0] sm:$0xff] }
 0x373   :  { %1613 = vmatpush.msra.mxu0 %v3314_v44  ;;  %1633 = vmatpush.msra.mxu1 %v3316_v45 }
 0x374   :  { %v3250_v36 = vadd.f32 %v1311_v29, %v1310_v30  ;;  %v1299_v40 = vadd.f32 %v2206_v55, %v1298_v32  ;;  %1653 = vmatpush.msra.mxu2 %v3318_v46  ;;  %1675 = vmatpush.msra.mxu3 %v3350_v13  ;;  %v3364_v32 = vld [vmem:[#allocation5 + $0xf8] sm:$0xff] }
 0x375   :  { %1614 = vmatpush.msra.mxu0 %v3326_v52  ;;  %1634 = vmatpush.msra.mxu1 %v3328_v53 }
 0x376   :  { %2209 = vtanh.f32 %v3250_v36  ;;  %v1303_v25 = vsel %vm1302_vm14, %v2206_v55, %v1299_v40  ;;  %v3777_v55 = vld [vmem:[#allocation24_spill] sm:$0xff]  ;;  %1654 = vmatpush.msra.mxu2 %v3330_v54  ;;  %1676 = vmatpush.msra.mxu3 %v3364_v32 }
 0x377   :  { %v1308_v43 = vsel %vm1305_vm15, %v1307_v26, %v1303_v25  ;;  %v130_v62 = vmul.f32 %v3765_v58, %v3777_v55  ;;  %v131_v1 = vmul.f32 %v3766_v18, %v3777_v55  ;;  %1615 = vmatpush.msra.mxu0 %v3342_v2  ;;  %1635 = vmatpush.msra.mxu1 %v3344_v3  ;;  %v3369_v25 = vld [vmem:[#allocation5 + $0xc0] sm:$0xff]  ;;  %v3371_v26 = vld [vmem:[#allocation5 + $0xc8] sm:$0xff] }
 0x378   :  { %1655 = vmatpush.msra.mxu2 %v3346_v11  ;;  %v3424_v58 = vld [vmem:[#allocation5 + $0x48] sm:$0xff] }
 0x379   :  { %v172_v29 = vadd.f32 %v3767_v50, %v130_v62  ;;  %v173_v30 = vadd.f32 %v3768_v57, %v131_v1  ;;  %1616 = vmatpush.msra.mxu0 %v3354_v19  ;;  %1636 = vmatpush.msra.mxu1 %v3356_v20  ;;  %v3387_v62 = vld [vmem:[#allocation5 + $0xa0] sm:$0xff]  ;;  %v3389_v1 = vld [vmem:[#allocation5 + $0xa8] sm:$0xff]  ;;  %v3416_v57 = vld [vmem:[#allocation5 + $0x70] sm:$0xff]  ;;  %3786 = vst [vmem:[#allocation27_spill] sm:$0xff] %v3424_v58 }
 0x37a   :  { %1656 = vmatpush.msra.mxu2 %v3358_v49  ;;  %3783 = vst [vmem:[#allocation45_spill] sm:$0xff] %v3416_v57  ;;  %v3420_v50 = vld [vmem:[#allocation5 + $0x40] sm:$0xff] }
 0x37b   :  { %1617 = vmatpush.msra.mxu0 %v3369_v25  ;;  %1637 = vmatpush.msra.mxu1 %v3371_v26  ;;  %3785 = vst [vmem:[#allocation26_spill] sm:$0xff] %v3420_v50 }
 0x37c   :  { %v2210_v37 = vpop.eup %2209 }
 0x37d   :  { %v1314_v39 = vmul.f32 %v2210_v37, %v1308_v43  ;;  %v3373_v37 = vld [vmem:[#allocation5 + $0xd0] sm:$0xff]  ;;  %1618 = vmatpush.msra.mxu0 %v3387_v62  ;;  %1638 = vmatpush.msra.mxu1 %v3389_v1 }
 0x37e   :  { %1657 = vmatpush.msra.mxu2 %v3373_v37 }
 0x37f   :  { %1404 = vmatmul.f32.vlgmr.msrb.gmra.mxu0 %v1314_v39  ;;  %1424 = vmatmul.f32.vlgmr.msrb.gmra.mxu1 %v1314_v39  ;;  %2211 = vtanh.f32 %v1314_v39 }
 0x380   :  { %1444 = vmatmul.f32.vlgmr.msrb.gmra.mxu2 %v1314_v39  ;;  %1464 = vmatmul.f32.vlgmr.msrb.gmra.mxu3 %v1314_v39 }
 0x385   :  { %v2212_v63 = vpop.eup %2211 }
 0x386   :  { %v2003_v6 = vmul.f32 %v3227_v10, %v2212_v63  ;;  %v3377_v63 = vld [vmem:[#allocation5 + $0xd8] sm:$0xff]  ;;  %v3432_v10 = vld [vmem:[#allocation5 + $0x20] sm:$0xff] }
 0x387   :  { %1677 = vmatpush.msra.mxu3 %v3377_v63 }
 0x388   :  { %2015 = vadd.xlane.f32.xlu2 %v2003_v6  ;;  %v133_v6 = vmul.f32 %v3770_v5, %v3777_v55  ;;  %v3411_v5 = vld [vmem:[#allocation5 + $0x68] sm:$0xff] }
 0x389   :  { %3782 = vst [vmem:[#allocation44_spill] sm:$0xff] %v3411_v5 }
 0x3fb   :  { %v2016_v24 = vpop.xlane.xlu2 %2015 }
 0x3fc   :  { %v2031_v40 = vadd.f32 %v3236_v42, %v2016_v24  ;;  %v1405_v41 = vpop.f32.mrf.mxu0  ;;  %v1425_v8 = vpop.f32.mrf.mxu1  ;;  %v3391_v24 = vld [vmem:[#allocation5 + $0xb0] sm:$0xff]  ;;  %v175_v42 = vadd.f32 %v3771_v31, %v133_v6  ;;  %v3428_v6 = vld [vmem:[#allocation5 + $0x58] sm:$0xff] }
 0x3fd   :  { %v1468_v43 = vadd.f32 %v1405_v41, %v172_v29  ;;  %v1469_v39 = vadd.f32 %v1425_v8, %v173_v30  ;;  %1658 = vmatpush.msra.mxu2 %v3391_v24  ;;  %v3399_v41 = vld [vmem:[#allocation5 + $0x80] sm:$0xff]  ;;  %v3401_v8 = vld [vmem:[#allocation5 + $0x88] sm:$0xff] }
 0x3fe   :  { %2040 = vst.msk [vmem:[%s3623_s8 + $0x20] sm:$0xff] %vm2035_vm12, %v2031_v40  ;;  %v3395_v40 = vld [vmem:[#allocation5 + $0xb8] sm:$0xff]  ;;  %1619 = vmatpush.msra.mxu0 %v3399_v41  ;;  %1639 = vmatpush.msra.mxu1 %v3401_v8 }
 0x3ff   :  { %v2103_v29 = vmul.f32 -1.442695, %v1468_v43  ;;  %v2104_v30 = vmul.f32 -1.442695, %v1469_v39  ;;  %1678 = vmatpush.msra.mxu3 %v3395_v40  ;;  %3778 = vst [vmem:[#allocation40_spill] sm:$0xff] %v3401_v8  ;;  %v3407_v43 = vld [vmem:[#allocation5 + $0x98] sm:$0xff]  ;;  %1659 = vmatpush.msra.mxu2 %v3403_v56 }
 0x400   :  { %3780 = vst [vmem:[#allocation42_spill] sm:$0xff] %v3407_v43  ;;  %v3409_v39 = vld [vmem:[#allocation5 + $0x60] sm:$0xff]  ;;  %1640 = vmatpush.msra.mxu1 %v3411_v5  ;;  %v3438_v5 = vld [vmem:[#allocation5 + $0x30] sm:$0xff] }
 0x401   :  { %2213 = vpow2.f32 %v2103_v29  ;;  %3781 = vst [vmem:[#allocation43_spill] sm:$0xff] %v3409_v39  ;;  %1679 = vmatpush.msra.mxu3 %v3407_v43  ;;  %v3418_v29 = vld [vmem:[#allocation5 + $0x78] sm:$0xff]  ;;  %1620 = vmatpush.msra.mxu0 %v3409_v39  ;;  %v3434_v43 = vld [vmem:[#allocation5 + $0x28] sm:$0xff] }
 0x402   :  { %2215 = vpow2.f32 %v2104_v30  ;;  %3784 = vst [vmem:[#allocation46_spill] sm:$0xff] %v3418_v29  ;;  %v3426_v30 = vld [vmem:[#allocation5 + $0x50] sm:$0xff]  ;;  %1660 = vmatpush.msra.mxu2 %v3416_v57  ;;  %1641 = vmatpush.msra.mxu1 %v3424_v58  ;;  %v3440_v39 = vld [vmem:[#allocation5 + $0x38] sm:$0xff] }
 0x403   :  { %v1465_v18 = vpop.f32.mrf.mxu3  ;;  %1680 = vmatpush.msra.mxu3 %v3418_v29  ;;  %3787 = vst [vmem:[#allocation28_spill] sm:$0xff] %v3434_v43  ;;  %1621 = vmatpush.msra.mxu0 %v3420_v50  ;;  %v3450_v50 = vld [vmem:[#allocation5 + $0x10] sm:$0xff]  ;;  %v3452_v58 = vld [vmem:[#allocation5 + $0x18] sm:$0xff] }
 0x404   :  { %v1471_v31 = vadd.f32 %v1465_v18, %v175_v42  ;;  %1661 = vmatpush.msra.mxu2 %v3426_v30  ;;  %v3444_v18 = vld [vmem:[#allocation5] sm:$0xff]  ;;  %v3446_v42 = vld [vmem:[#allocation5 + $0x8] sm:$0xff]  ;;  %1642 = vmatpush.msra.mxu1 %v3434_v43  ;;  %v132_v43 = vmul.f32 %v3772_v35, %v3777_v55 }
 0x405   :  { %1681 = vmatpush.msra.mxu3 %v3428_v6  ;;  %1622 = vmatpush.msra.mxu0 %v3432_v10 }
 0x406   :  { %v2105_v56 = vmul.f32 -1.442695, %v1471_v31  ;;  %1662 = vmatpush.msra.mxu2 %v3438_v5  ;;  %1643 = vmatpush.msra.mxu1 %v3446_v42  ;;  %v174_v55 = vadd.f32 %v3773_v9, %v132_v43  ;;  %v3798_v43 = vld [vmem:[#allocation38_spill] sm:$0xff] }
 0x407   :  { %v2214_v29 = vpop.eup %2213  ;;  %1682 = vmatpush.msra.mxu3 %v3440_v39  ;;  %1623 = vmatpush.msra.mxu0 %v3444_v18 }
 0x408   :  { %v2216_v57 = vpop.eup %2215  ;;  %v3454_v8 = vadd.f32 1.0, %v2214_v29  ;;  %2217 = vpow2.f32 %v2105_v56  ;;  %1663 = vmatpush.msra.mxu2 %v3450_v50  ;;  %1848 = vmatpush.msrb.mxu1 %v3256_v7  ;;  %v1445_v56 = vpop.f32.mrf.mxu2 }
 0x409   :  { %v3458_v31 = vadd.f32 1.0, %v2216_v57  ;;  %1683 = vmatpush.msra.mxu3 %v3452_v58  ;;  %1828 = vmatpush.msrb.mxu0 %v3254_v28  ;;  %v1470_v7 = vadd.f32 %v1445_v56, %v174_v55  ;;  %v3802_v55 = vld [vmem:[#allocation16_spill] sm:$0xff] }
 0x40a   :  { %2219 = vrcp.f32 %v3454_v8  ;;  %1868 = vmatpush.msrb.mxu2 %v3258_v14  ;;  %1849 = vmatpush.msrb.mxu1 %v3268_v12  ;;  %vm1481_vm2 = vweird.f32 %v3454_v8 }
 0x40b   :  { %2221 = vrcp.f32 %v3458_v31  ;;  %1888 = vmatpush.msrb.mxu3 %v3262_v16  ;;  %1829 = vmatpush.msrb.mxu0 %v3266_v4  ;;  %vm1500_vm3 = vweird.f32 %v3458_v31 }
 0x40c   :  { %1869 = vmatpush.msrb.mxu2 %v3270_v23  ;;  %1850 = vmatpush.msrb.mxu1 %v3280_v21 }
 0x40d   :  { %1889 = vmatpush.msrb.mxu3 %v3274_v60  ;;  %1830 = vmatpush.msrb.mxu0 %v3278_v38  ;;  %v1487_v60 = vand.u32 2147483648, %v3454_v8  ;;  %v1506_v38 = vand.u32 2147483648, %v3458_v31 }
 0x40e   :  { %v2218_v57 = vpop.eup %2217  ;;  %1870 = vmatpush.msrb.mxu2 %v3282_v0  ;;  %1851 = vmatpush.msrb.mxu1 %v3292_v27  ;;  %v1485_v0 = vand.u32 2147483647, %v3454_v8 }
 0x40f   :  { %v3477_v29 = vadd.f32 1.0, %v2218_v57  ;;  %1890 = vmatpush.msrb.mxu3 %v3286_v48  ;;  %1831 = vmatpush.msrb.mxu0 %v3290_v47  ;;  %v1504_v47 = vand.u32 2147483647, %v3458_v31 }
 0x410   :  { %v2220_v28 = vpop.eup %2219  ;;  %1871 = vmatpush.msrb.mxu2 %v3294_v34  ;;  %1852 = vmatpush.msrb.mxu1 %v3304_v59  ;;  %vm1486_vm6 = vcmp.eq.f32.partialorder %v1485_v0, 8.507059e+37 }
 0x411   :  { %v2222_v14 = vpop.eup %2221  ;;  %v1477_v16 = vmul.f32 %v2220_v28, %v3454_v8  ;;  %2223 = vrcp.f32 %v3477_v29  ;;  %1891 = vmatpush.msrb.mxu3 %v3298_v33  ;;  %1832 = vmatpush.msrb.mxu0 %v3302_v61  ;;  %vm1482_vm0 = vweird.f32 %v2220_v28  ;;  %v1488_v33 = vor.u32 1.1754944e-38, %v1487_v60  ;;  %v3797_v8 = vld [vmem:[#allocation28_spill] sm:$0xff] }
 0x412   :  { %v1496_v4 = vmul.f32 %v2222_v14, %v3458_v31  ;;  %2225 = vtanh.f32 %v1470_v7  ;;  %1872 = vmatpush.msrb.mxu2 %v3306_v17  ;;  %1853 = vmatpush.msrb.mxu1 %v3316_v45  ;;  %vm1501_vm1 = vweird.f32 %v2222_v14  ;;  %vm1483_vm4 = vmor %vm1481_vm2, %vm1482_vm0  ;;  %v1507_v17 = vor.u32 1.1754944e-38, %v1506_v38  ;;  %v3801_v31 = vld [vmem:[#allocation15_spill] sm:$0xff] }
 0x413   :  { %v1478_v12 = vsub.f32 1.0, %v1477_v16  ;;  %1892 = vmatpush.msrb.mxu3 %v3310_v22  ;;  %1833 = vmatpush.msrb.mxu0 %v3314_v44  ;;  %vm1502_vm5 = vmor %vm1500_vm3, %vm1501_vm1  ;;  %vm1505_vm7 = vcmp.eq.f32.partialorder %v1504_v47, 8.507059e+37  ;;  %vm1520_vm9 = vweird.f32 %v3477_v29  ;;  %v3806_v38 = vld [vmem:[#allocation19_spill] sm:$0xff] }
 0x414   :  { %v1497_v23 = vsub.f32 1.0, %v1496_v4  ;;  %1873 = vmatpush.msrb.mxu2 %v3318_v46  ;;  %1854 = vmatpush.msrb.mxu1 %v3328_v53  ;;  %v3805_v4 = vld [vmem:[#allocation18_spill] sm:$0xff] }
 0x415   :  { %v1479_v21 = vmul.f32 %v2220_v28, %v1478_v12  ;;  %1893 = vmatpush.msrb.mxu3 %v3322_v51  ;;  %1834 = vmatpush.msrb.mxu0 %v3326_v52 }
 0x416   :  { %v1498_v48 = vmul.f32 %v2222_v14, %v1497_v23  ;;  %1874 = vmatpush.msrb.mxu2 %v3330_v54  ;;  %1855 = vmatpush.msrb.mxu1 %v3344_v3  ;;  %v1526_v3 = vand.u32 2147483648, %v3477_v29 }
 0x417   :  { %v3502_v27 = vpop.eup %2223  ;;  %v1480_v34 = vadd.f32 %v2220_v28, %v1479_v21  ;;  %1894 = vmatpush.msrb.mxu3 %v3338_v15  ;;  %1835 = vmatpush.msrb.mxu0 %v3342_v2 }
 0x418   :  { %v1499_v61 = vadd.f32 %v2222_v14, %v1498_v48  ;;  %v1516_v59 = vmul.f32 %v3502_v27, %v3477_v29  ;;  %v2226_v44 = vpop.eup %2225  ;;  %1875 = vmatpush.msrb.mxu2 %v3346_v11  ;;  %1856 = vmatpush.msrb.mxu1 %v3356_v20  ;;  %vm1521_vm8 = vweird.f32 %v3502_v27  ;;  %v1524_v11 = vand.u32 2147483647, %v3477_v29  ;;  %v3790_v20 = vld [vmem:[#allocation42_spill] sm:$0xff] }
 0x419   :  { %v1484_v22 = vsel %vm1483_vm4, %v2220_v28, %v1480_v34  ;;  %1895 = vmatpush.msrb.mxu3 %v3350_v13  ;;  %1836 = vmatpush.msrb.mxu0 %v3354_v19  ;;  %v3788_v13 = vld [vmem:[#allocation40_spill] sm:$0xff]  ;;  %vm1522_vm10 = vmor %vm1520_vm9, %vm1521_vm8  ;;  %v3789_v19 = vld [vmem:[#allocation41_spill] sm:$0xff] }
 0x41a   :  { %v1489_v45 = vsel %vm1486_vm6, %v1488_v33, %v1484_v22  ;;  %v1503_v46 = vsel %vm1502_vm5, %v2222_v14, %v1499_v61  ;;  %v1517_v51 = vsub.f32 1.0, %v1516_v59  ;;  %1876 = vmatpush.msrb.mxu2 %v3358_v49  ;;  %1857 = vmatpush.msrb.mxu1 %v3371_v26  ;;  %v1527_v26 = vor.u32 1.1754944e-38, %v1526_v3 }
 0x41b   :  { %v1508_v52 = vsel %vm1505_vm7, %v1507_v17, %v1503_v46  ;;  %v1531_v53 = vmul.f32 %v2226_v44, %v1489_v45  ;;  %1896 = vmatpush.msrb.mxu3 %v3364_v32  ;;  %1837 = vmatpush.msrb.mxu0 %v3369_v25  ;;  %v3791_v32 = vld [vmem:[#allocation43_spill] sm:$0xff]  ;;  %v3792_v25 = vld [vmem:[#allocation44_spill] sm:$0xff]  ;;  %vm1525_vm11 = vcmp.eq.f32.partialorder %v1524_v11, 8.507059e+37 }
 0x41c   :  { %v1530_v54 = vmul.f32 %v1508_v52, %v3250_v36  ;;  %v1518_v15 = vmul.f32 %v3502_v27, %v1517_v51  ;;  %1877 = vmatpush.msrb.mxu2 %v3373_v37  ;;  %1858 = vmatpush.msrb.mxu1 %v3389_v1  ;;  %v3793_v37 = vld [vmem:[#allocation45_spill] sm:$0xff]  ;;  %v3796_v1 = vld [vmem:[#allocation27_spill] sm:$0xff] }
 0x41d   :  { %1897 = vmatpush.msrb.mxu3 %v3377_v63  ;;  %1838 = vmatpush.msrb.mxu0 %v3387_v62  ;;  %v3794_v63 = vld [vmem:[#allocation46_spill] sm:$0xff] }
 0x41e   :  { %v3526_v2 = vadd.f32 %v1531_v53, %v1530_v54  ;;  %v1519_v36 = vadd.f32 %v3502_v27, %v1518_v15  ;;  %1878 = vmatpush.msrb.mxu2 %v3391_v24  ;;  %1859 = vmatpush.msrb.mxu1 %v3788_v13  ;;  %v3795_v62 = vld [vmem:[#allocation26_spill] sm:$0xff] }
 0x41f   :  { %1898 = vmatpush.msrb.mxu3 %v3395_v40  ;;  %1839 = vmatpush.msrb.mxu0 %v3399_v41 }
 0x420   :  { %2227 = vtanh.f32 %v3526_v2  ;;  %1879 = vmatpush.msrb.mxu2 %v3789_v19  ;;  %v1523_v49 = vsel %vm1522_vm10, %v3502_v27, %v1519_v36  ;;  %1860 = vmatpush.msrb.mxu1 %v3792_v25 }
 0x421   :  { %1899 = vmatpush.msrb.mxu3 %v3790_v20  ;;  %1840 = vmatpush.msrb.mxu0 %v3791_v32  ;;  %v1528_v40 = vsel %vm1525_vm11, %v1527_v26, %v1523_v49 }
 0x422   :  { %1880 = vmatpush.msrb.mxu2 %v3793_v37  ;;  %1861 = vmatpush.msrb.mxu1 %v3796_v1 }
 0x423   :  { %1900 = vmatpush.msrb.mxu3 %v3794_v63  ;;  %1841 = vmatpush.msrb.mxu0 %v3795_v62 }
 0x424   :  { %1881 = vmatpush.msrb.mxu2 %v3426_v30  ;;  %1862 = vmatpush.msrb.mxu1 %v3797_v8 }
 0x425   :  { %1901 = vmatpush.msrb.mxu3 %v3428_v6  ;;  %1842 = vmatpush.msrb.mxu0 %v3432_v10  ;;  %v3800_v6 = vld [vmem:[#allocation14_spill] sm:$0xff] }
 0x426   :  { %v2228_v24 = vpop.eup %2227  ;;  %1882 = vmatpush.msrb.mxu2 %v3438_v5  ;;  %1863 = vmatpush.msrb.mxu1 %v3446_v42  ;;  %v3799_v5 = vld [vmem:[#allocation31_spill] sm:$0xff] }
 0x427   :  { %v1534_v41 = vmul.f32 %v2228_v24, %v1528_v40  ;;  %1902 = vmatpush.msrb.mxu3 %v3440_v39  ;;  %1843 = vmatpush.msrb.mxu0 %v3444_v18  ;;  %v134_v39 = vmul.f32 %v3800_v6, %v3799_v5  ;;  %v135_v56 = vmul.f32 %v3801_v31, %v3799_v5  ;;  %v3803_v18 = vld [vmem:[#allocation17_spill] sm:$0xff]  ;;  %v3804_v42 = vld [vmem:[#allocation39_spill] sm:$0xff] }
 0x428   :  { %1883 = vmatpush.msrb.mxu2 %v3450_v50  ;;  %v137_v12 = vmul.f32 %v3805_v4, %v3799_v5  ;;  %v136_v59 = vmul.f32 %v3772_v35, %v3799_v5 }
 0x429   :  { %1624 = vmatmul.f32.vlgmr.msra.gmra.mxu0 %v1534_v41  ;;  %1644 = vmatmul.f32.vlgmr.msra.gmra.mxu1 %v1534_v41  ;;  %2229 = vtanh.f32 %v1534_v41  ;;  %v176_v29 = vadd.f32 %v3802_v55, %v134_v39  ;;  %v177_v28 = vadd.f32 %v3803_v18, %v135_v56 }
 0x42a   :  { %1664 = vmatmul.f32.vlgmr.msra.gmra.mxu2 %v1534_v41  ;;  %1684 = vmatmul.f32.vlgmr.msra.gmra.mxu3 %v1534_v41  ;;  %v179_v21 = vadd.f32 %v3806_v38, %v137_v12  ;;  %v178_v44 = vadd.f32 %v3773_v9, %v136_v59 }
 0x42b   :  { %1903 = vmatpush.msrb.mxu3 %v3452_v58 }
 0x42f   :  { %v2230_v10 = vpop.eup %2229 }
 0x430   :  { %v2004_v30 = vmul.f32 %v3798_v43, %v2230_v10 }
 0x432   :  { %2017 = vadd.xlane.f32.xlu0 %v2004_v30 }
 0x4a5   :  { %v2018_v57 = vpop.xlane.xlu0 %2017 }
 0x4a6   :  { %v2032_v7 = vadd.f32 %v3804_v42, %v2018_v57  ;;  %v1625_v50 = vpop.f32.mrf.mxu0  ;;  %v1645_v14 = vpop.f32.mrf.mxu1 }
 0x4a7   :  { %v1688_v58 = vadd.f32 %v1625_v50, %v176_v29  ;;  %v1689_v16 = vadd.f32 %v1645_v14, %v177_v28 }
 0x4a8   :  { %2041 = vst.msk [vmem:[%s3623_s8 + $0x28] sm:$0xff] %vm2035_vm12, %v2032_v7 }
 0x4a9   :  { %v2106_v23 = vmul.f32 -1.442695, %v1688_v58  ;;  %v2107_v60 = vmul.f32 -1.442695, %v1689_v16 }
 0x4ab   :  { %2231 = vpow2.f32 %v2106_v23  ;;  %v3807_v23 = vld [vmem:[#allocation37_spill] sm:$0xff] }
 0x4ac   :  { %2233 = vpow2.f32 %v2107_v60  ;;  %v138_v60 = vmul.f32 %v3800_v6, %v3807_v23 }
 0x4ad   :  { %v1685_v0 = vpop.f32.mrf.mxu3  ;;  %v1665_v17 = vpop.f32.mrf.mxu2 }
 0x4ae   :  { %v1691_v48 = vadd.f32 %v1685_v0, %v179_v21  ;;  %v1690_v51 = vadd.f32 %v1665_v17, %v178_v44  ;;  %v139_v21 = vmul.f32 %v3801_v31, %v3807_v23 }
 0x4b0   :  { %v2108_v47 = vmul.f32 -1.442695, %v1691_v48  ;;  %v180_v48 = vadd.f32 %v3802_v55, %v138_v60  ;;  %v2269_v60 = vld [vmem:[%s3619_s4] ss:$0 sm:$0xff] }
 0x4b1   :  { %v2232_v27 = vpop.eup %2231 }
 0x4b2   :  { %v2234_v34 = vpop.eup %2233  ;;  %v1695_v33 = vadd.f32 1.0, %v2232_v27  ;;  %2235 = vpow2.f32 %v2108_v47  ;;  %v181_v47 = vadd.f32 %v3803_v18, %v139_v21 }
 0x4b3   :  { %v1714_v61 = vadd.f32 1.0, %v2234_v34 }
 0x4b4   :  { %2237 = vrcp.f32 %v1695_v33  ;;  %v1707_v3 = vand.u32 2147483648, %v1695_v33  ;;  %v1705_v19 = vand.u32 2147483647, %v1695_v33  ;;  %vm1701_vm15 = vweird.f32 %v1695_v33 }
 0x4b5   :  { %2239 = vrcp.f32 %v1714_v61  ;;  %v1726_v11 = vand.u32 2147483648, %v1714_v61  ;;  %v1724_v49 = vand.u32 2147483647, %v1714_v61  ;;  %vm1720_vm0 = vweird.f32 %v1714_v61 }
 0x4b6   :  { %v1708_v26 = vor.u32 1.1754944e-38, %v1707_v3  ;;  %vm1706_vm3 = vcmp.eq.f32.partialorder %v1705_v19, 8.507059e+37 }
 0x4b7   :  { %v1727_v62 = vor.u32 1.1754944e-38, %v1726_v11  ;;  %vm1725_vm4 = vcmp.eq.f32.partialorder %v1724_v49, 8.507059e+37 }
 0x4b8   :  { %v2236_v22 = vpop.eup %2235 }
 0x4b9   :  { %v1734_v45 = vadd.f32 1.0, %v2236_v22 }
 0x4ba   :  { %v2238_v46 = vpop.eup %2237 }
 0x4bb   :  { %v2240_v52 = vpop.eup %2239  ;;  %v1697_v53 = vmul.f32 %v2238_v46, %v1695_v33  ;;  %2241 = vrcp.f32 %v1734_v45  ;;  %vm1702_vm13 = vweird.f32 %v2238_v46  ;;  %v1746_v29 = vand.u32 2147483648, %v1734_v45 }
 0x4bc   :  { %v1716_v54 = vmul.f32 %v2240_v52, %v1714_v61  ;;  %2243 = vtanh.f32 %v1690_v51  ;;  %vm1721_vm14 = vweird.f32 %v2240_v52  ;;  %vm1703_vm1 = vmor %vm1701_vm15, %vm1702_vm13  ;;  %vm1740_vm6 = vweird.f32 %v1734_v45 }
 0x4bd   :  { %v1698_v15 = vsub.f32 1.0, %v1697_v53  ;;  %vm1722_vm2 = vmor %vm1720_vm0, %vm1721_vm14  ;;  %v1744_v28 = vand.u32 2147483647, %v1734_v45  ;;  %v1747_v50 = vor.u32 1.1754944e-38, %v1746_v29  ;;  %v140_v51 = vmul.f32 %v3772_v35, %v3807_v23 }
 0x4be   :  { %v1717_v36 = vsub.f32 1.0, %v1716_v54 }
 0x4bf   :  { %v1699_v13 = vmul.f32 %v2238_v46, %v1698_v15  ;;  %vm1745_vm8 = vcmp.eq.f32.partialorder %v1744_v28, 8.507059e+37  ;;  %v182_v53 = vadd.f32 %v3773_v9, %v140_v51 }
 0x4c0   :  { %v1718_v20 = vmul.f32 %v2240_v52, %v1717_v36 }
 0x4c1   :  { %v2242_v32 = vpop.eup %2241  ;;  %v1700_v25 = vadd.f32 %v2238_v46, %v1699_v13 }
 0x4c2   :  { %v1719_v37 = vadd.f32 %v2240_v52, %v1718_v20  ;;  %v1736_v63 = vmul.f32 %v2242_v32, %v1734_v45  ;;  %v2244_v24 = vpop.eup %2243  ;;  %vm1741_vm5 = vweird.f32 %v2242_v32 }
 0x4c3   :  { %v1704_v1 = vsel %vm1703_vm1, %v2238_v46, %v1700_v25  ;;  %vm1742_vm7 = vmor %vm1740_vm6, %vm1741_vm5 }
 0x4c4   :  { %v1709_v40 = vsel %vm1706_vm3, %v1708_v26, %v1704_v1  ;;  %v1723_v41 = vsel %vm1722_vm2, %v2240_v52, %v1719_v37  ;;  %v1737_v8 = vsub.f32 1.0, %v1736_v63 }
 0x4c5   :  { %v1728_v10 = vsel %vm1725_vm4, %v1727_v62, %v1723_v41  ;;  %v1751_v30 = vmul.f32 %v2244_v24, %v1709_v40 }
 0x4c6   :  { %v1750_v5 = vmul.f32 %v1728_v10, %v3526_v2  ;;  %v1738_v39 = vmul.f32 %v2242_v32, %v1737_v8 }
 0x4c8   :  { %v3580_v56 = vadd.f32 %v1751_v30, %v1750_v5  ;;  %v1739_v57 = vadd.f32 %v2242_v32, %v1738_v39 }
 0x4ca   :  { %2245 = vtanh.f32 %v3580_v56  ;;  %v1743_v7 = vsel %vm1742_vm7, %v2242_v32, %v1739_v57 }
 0x4cb   :  { %v1748_v58 = vsel %vm1745_vm8, %v1747_v50, %v1743_v7 }
 0x4d0   :  { %v2246_v14 = vpop.eup %2245 }
 0x4d1   :  { %v1754_v16 = vmul.f32 %v2246_v14, %v1748_v58 }
 0x4d3   :  { %1844 = vmatmul.f32.vlgmr.msrb.gmra.mxu0 %v1754_v16  ;;  %1864 = vmatmul.f32.vlgmr.msrb.gmra.mxu1 %v1754_v16  ;;  %2247 = vtanh.f32 %v1754_v16 }
 0x4d4   :  { %1884 = vmatmul.f32.vlgmr.msrb.gmra.mxu2 %v1754_v16  ;;  %1904 = vmatmul.f32.vlgmr.msrb.gmra.mxu3 %v1754_v16 }
 0x4d9   :  { %v2248_v2 = vpop.eup %2247 }
 0x4da   :  { %v2005_v12 = vmul.f32 %v3798_v43, %v2248_v2  ;;  %v141_v43 = vmul.f32 %v3805_v4, %v3807_v23 }
 0x4dc   :  { %2019 = vadd.xlane.f32.xlu1 %v2005_v12  ;;  %v183_v55 = vadd.f32 %v3806_v38, %v141_v43 }
 0x54f   :  { %v2020_v0 = vpop.xlane.xlu1 %2019 }
 0x550   :  { %v2033_v27 = vadd.f32 %v3804_v42, %v2020_v0  ;;  %v1845_v34 = vpop.f32.mrf.mxu0  ;;  %v1865_v33 = vpop.f32.mrf.mxu1 }
 0x551   :  { %v1908_v61 = vadd.f32 %v1845_v34, %v180_v48  ;;  %v1909_v59 = vadd.f32 %v1865_v33, %v181_v47  ;;  %v2270_v48 = vld [vmem:[#allocation4] ss:$0 sm:$0xff] }
 0x552   :  { %2042 = vst.msk [vmem:[%s3623_s8 + $0x30] sm:$0xff] %vm2035_vm12, %v2033_v27 }
 0x553   :  { %v2109_v6 = vmul.f32 -1.442695, %v1908_v61  ;;  %v2110_v31 = vmul.f32 -1.442695, %v1909_v59 }
 0x555   :  { %2249 = vpow2.f32 %v2109_v6 }
 0x556   :  { %2251 = vpow2.f32 %v2110_v31 }
 0x557   :  { %v1905_v18 = vpop.f32.mrf.mxu3  ;;  %v1885_v4 = vpop.f32.mrf.mxu2 }
 0x558   :  { %v1911_v42 = vadd.f32 %v1905_v18, %v183_v55  ;;  %v1910_v38 = vadd.f32 %v1885_v4, %v182_v53 }
 0x55a   :  { %v2111_v17 = vmul.f32 -1.442695, %v1911_v42 }
 0x55b   :  { %v2250_v22 = vpop.eup %2249 }
 0x55c   :  { %v2252_v44 = vpop.eup %2251  ;;  %v1915_v45 = vadd.f32 1.0, %v2250_v22  ;;  %2253 = vpow2.f32 %v2111_v17 }
 0x55d   :  { %v1934_v46 = vadd.f32 1.0, %v2252_v44 }
 0x55e   :  { %2255 = vrcp.f32 %v1915_v45  ;;  %v1927_v20 = vand.u32 2147483648, %v1915_v45  ;;  %v1925_v35 = vand.u32 2147483647, %v1915_v45  ;;  %vm1921_vm11 = vweird.f32 %v1915_v45 }
 0x55f   :  { %2257 = vrcp.f32 %v1934_v46  ;;  %v1946_v49 = vand.u32 2147483648, %v1934_v46  ;;  %v1944_v26 = vand.u32 2147483647, %v1934_v46  ;;  %vm1940_vm13 = vweird.f32 %v1934_v46 }
 0x560   :  { %v1928_v63 = vor.u32 1.1754944e-38, %v1927_v20  ;;  %vm1926_vm0 = vcmp.eq.f32.partialorder %v1925_v35, 8.507059e+37 }
 0x561   :  { %v1947_v24 = vor.u32 1.1754944e-38, %v1946_v49  ;;  %vm1945_vm1 = vcmp.eq.f32.partialorder %v1944_v26, 8.507059e+37 }
 0x562   :  { %v2254_v52 = vpop.eup %2253 }
 0x563   :  { %v1954_v54 = vadd.f32 1.0, %v2254_v52 }
 0x564   :  { %v2256_v15 = vpop.eup %2255 }
 0x565   :  { %v2258_v36 = vpop.eup %2257  ;;  %v1917_v3 = vmul.f32 %v2256_v15, %v1915_v45  ;;  %2259 = vrcp.f32 %v1954_v54  ;;  %vm1922_vm9 = vweird.f32 %v2256_v15  ;;  %v1966_v50 = vand.u32 2147483648, %v1954_v54 }
 0x566   :  { %v1936_v11 = vmul.f32 %v2258_v36, %v1934_v46  ;;  %2261 = vtanh.f32 %v1910_v38  ;;  %vm1941_vm10 = vweird.f32 %v2258_v36  ;;  %vm1923_vm14 = vmor %vm1921_vm11, %vm1922_vm9  ;;  %vm1960_vm3 = vweird.f32 %v1954_v54 }
 0x567   :  { %v1918_v13 = vsub.f32 1.0, %v1917_v3  ;;  %vm1942_vm15 = vmor %vm1940_vm13, %vm1941_vm10  ;;  %v1964_v14 = vand.u32 2147483647, %v1954_v54  ;;  %v1967_v16 = vor.u32 1.1754944e-38, %v1966_v50 }
 0x568   :  { %v1937_v19 = vsub.f32 1.0, %v1936_v11 }
 0x569   :  { %v1919_v32 = vmul.f32 %v2256_v15, %v1918_v13  ;;  %vm1965_vm5 = vcmp.eq.f32.partialorder %v1964_v14, 8.507059e+37 }
 0x56a   :  { %v1938_v25 = vmul.f32 %v2258_v36, %v1937_v19 }
 0x56b   :  { %v2260_v37 = vpop.eup %2259  ;;  %v1920_v9 = vadd.f32 %v2256_v15, %v1919_v32 }
 0x56c   :  { %v1939_v62 = vadd.f32 %v2258_v36, %v1938_v25  ;;  %v1956_v1 = vmul.f32 %v2260_v37, %v1954_v54  ;;  %v2262_v41 = vpop.eup %2261  ;;  %vm1961_vm2 = vweird.f32 %v2260_v37 }
 0x56d   :  { %v1924_v40 = vsel %vm1923_vm14, %v2256_v15, %v1920_v9  ;;  %vm1962_vm4 = vmor %vm1960_vm3, %vm1961_vm2 }
 0x56e   :  { %v1929_v8 = vsel %vm1926_vm0, %v1928_v63, %v1924_v40  ;;  %v1943_v10 = vsel %vm1942_vm15, %v2258_v36, %v1939_v62  ;;  %v1957_v30 = vsub.f32 1.0, %v1956_v1 }
 0x56f   :  { %v1948_v5 = vsel %vm1945_vm1, %v1947_v24, %v1943_v10  ;;  %v1971_v39 = vmul.f32 %v2262_v41, %v1929_v8 }
 0x570   :  { %v1970_v57 = vmul.f32 %v1948_v5, %v3580_v56  ;;  %v1958_v29 = vmul.f32 %v2260_v37, %v1957_v30 }
 0x572   :  { %v1972_v28 = vadd.f32 %v1971_v39, %v1970_v57  ;;  %v1959_v7 = vadd.f32 %v2260_v37, %v1958_v29 }
 0x574   :  { %2263 = vtanh.f32 %v1972_v28  ;;  %1978 = vst [vmem:[#allocation9] sm:$0xff] %v1972_v28  ;;  %v1963_v58 = vsel %vm1962_vm4, %v2260_v37, %v1959_v7 }
 0x575   :  { %v1968_v12 = vsel %vm1965_vm5, %v1967_v16, %v1963_v58  ;;  %2067 = dma.vmem_to_hbm [thread:$0]  %s2063_s17, 128, %s2065_s20, [#allocation10]  }
 0x57a   :  { %v2264_v2 = vpop.eup %2263 }
 0x57b   :  { %v1974_v23 = vmul.f32 %v2264_v2, %v1968_v12 }
 0x57d   :  { %2265 = vtanh.f32 %v1974_v23  ;;  %1977 = vst [vmem:[#allocation8] sm:$0xff] %v1974_v23 }
 0x57e   :  { %2056 = dma.vmem_to_hbm [thread:$0]  %s2052_s1, 128, %s2054_s15, [#allocation7]  }
 0x583   :  { %v2266_v56 = vpop.eup %2265 }
 0x584   :  { %v2006_v21 = vmul.f32 %v2269_v60, %v2266_v56 }
 0x586   :  { %2021 = vadd.xlane.f32.xlu2 %v2006_v21 }
 0x5f9   :  { %v2022_v0 = vpop.xlane.xlu2 %2021 }
 0x5fa   :  { %v2034_v47 = vadd.f32 %v2270_v48, %v2022_v0 }
 0x5fc   :  { %2043 = vst.msk [vmem:[%s3623_s8 + $0x38] sm:$0xff] %vm2035_vm12, %v2034_v47 }
 0x5fd   :  { %2345 = dma.done.wait [#allocation7], 128  }
 0x5fe   :  { %2346 = vsyncadd [#allocation7], 4294967168 }
 0x5ff   :  { %2347 = dma.done.wait [#allocation10], 128  }
 0x600   :  { %2348 = vsyncadd [#allocation10], 4294967168 }
 0x601   :  { %2078 = vsyncpa [#allocation6], 1 }
 0x602   :  { %2079 = vsyncpa [#allocation7], 1 }
 0x603   :  { %2080 = vsyncpa [#allocation10], 1 }

</bundles_post_ra>
